<compile_context>
chip_gen: v6e
topology: v6e:2x2x1
jax: 0.10.0
libtpu: 0.0.40
codegen_flags: <defaults>
</compile_context>

<pallas_src>
import functools

import jax
import jax.numpy as jnp
from jax import lax
from jax.experimental import pallas as pl
from jax.experimental.pallas import tpu as pltpu

_BN_EPS = 1e-5


# --------------------------------------------------------------------------- kernel
def _make_fused_kernel(h, w, chans, acts, pooling):
    """chans = (cin, c1, c2[, c3]); acts per conv layer; pooling: fuse MaxPool2d(3,2,1)."""
    hw = h * w
    n_layers = len(chans) - 1

    def kernel(*refs):
        # refs: x, (w, b) * n_layers, [sel], out, col_scratch
        x_ref = refs[0]
        wb_refs = refs[1:1 + 2 * n_layers]
        pos = 1 + 2 * n_layers
        if pooling:
            sel_ref = refs[pos]
            pos += 1
        o_ref = refs[pos]
        col_ref = refs[pos + 1]

        # Column index along the flat (lane) axis, used to mask columns that fall
        # outside the image for the dx=0 / dx=2 taps.
        p_idx = lax.broadcasted_iota(jnp.int32, (1, hw), 1)
        if (w & (w - 1)) == 0:                       # power-of-two width: cheap bitwise path
            col_idx = jnp.bitwise_and(p_idx, w - 1)
        else:
            col_idx = p_idx % w
        not_first_col = col_idx != 0
        not_last_col = col_idx != (w - 1)

        def tap_shift(y, dy, dx, fill):
            """y[c, p] -> y[c, p + (dy-1)*w + (dx-1)], with `fill` outside the image.

            A flat lane shift with end-fill plus a column mask is exact for 3x3/pad=1:
            every out-of-image read either falls outside [0, H*W) (handled by the fill)
            or is a dx=0/dx=2 column-boundary position (handled by the mask)."""
            c = y.shape[0]
            off = (dy - 1) * w + (dx - 1)
            if off > 0:
                s = jnp.concatenate(
                    [y[:, off:], jnp.full((c, off), fill, y.dtype)], axis=1)
            elif off < 0:
                s = jnp.concatenate(
                    [jnp.full((c, -off), fill, y.dtype), y[:, :hw + off]], axis=1)
            else:
                s = y
            if dx == 0:
                s = jnp.where(not_first_col, s, fill)
            elif dx == 2:
                s = jnp.where(not_last_col, s, fill)
            return s

        y = x_ref[0, :, :].astype(jnp.float32)                     # (Cin, H*W), lane-dense

        for li in range(n_layers):
            w_ref = wb_refs[2 * li]
            b_ref = wb_refs[2 * li + 1]
            ci = chans[li]
            # im2col: (9*Cin, H*W) built once in VMEM scratch from 9 lane shifts.
            for dy in range(3):
                for dx in range(3):
                    t = 3 * dy + dx
                    col_ref[t * ci:(t + 1) * ci, :] = tap_shift(y, dy, dx, 0.0)
            # Single MXU matmul per conv layer: K = 9*Cin, N = H*W (lane-dense).
            acc = jnp.dot(w_ref[...], col_ref[0:9 * ci, :],
                          preferred_element_type=jnp.float32)      # (Cout, H*W)
            acc = acc + b_ref[...]                                  # folded conv bias + BN shift
            if acts[li] == "sigmoid":
                y = 1.0 / (1.0 + jnp.exp(-acc))
            else:
                y = jnp.maximum(acc, 0.0)

        if pooling:
            fill = -1e30                                            # finite "-inf": keeps 0*fill finite
            m = tap_shift(y, 0, 0, fill)
            for dy in range(3):
                for dx in range(3):
                    if dy == 0 and dx == 0:
                        continue
                    m = jnp.maximum(m, tap_shift(y, dy, dx, fill))  # 3x3 max at every position
            # stride-2 subsample via a 0/1 selection matmul (no strided ref reads).
            y = jnp.dot(m, sel_ref[...], preferred_element_type=jnp.float32)

        o_ref[0, :, :] = y.astype(o_ref.dtype)                      # one dense full-block store

    return kernel


# --------------------------------------------------------------------------- wrapper
def convolution_creation_layer(image, layers, *, pooling=True, last_activation="ReLU"):
    """Pallas equivalent of ConvolutionCreationLayer.forward (NCHW in, NCHW out)."""
    n, cin, h, w = image.shape
    hw = h * w
    chans = (cin,) + tuple(int(p["w"].shape[0]) for p in layers)
    n_layers = len(layers)
    acts = ["relu"] * n_layers
    if n_layers >= 3 and last_activation == "Sigmoid":
        acts[-1] = "sigmoid"

    x = image.reshape(n, cin, hw).astype(jnp.float32)               # NCHW -> (N, C, H*W), no transpose

    args = [x]
    in_specs = [pl.BlockSpec((1, cin, hw), lambda i: (i, 0, 0))]
    for li, p in enumerate(layers):
        ci, co = chans[li], chans[li + 1]
        scale = (p["gamma"] / jnp.sqrt(p["var"] + _BN_EPS)).astype(jnp.float32)
        w_f = p["w"].astype(jnp.float32) * scale[:, None, None, None]        # fold BN scale
        w_f = jnp.transpose(w_f, (0, 2, 3, 1)).reshape(co, 9 * ci)           # (Cout, 9*Cin), tap-major
        b_f = ((p["b"] - p["mean"]) * scale + p["beta"]).astype(jnp.float32).reshape(co, 1)
        args += [w_f, b_f]
        in_specs += [pl.BlockSpec((co, 9 * ci), lambda i: (0, 0)),
                     pl.BlockSpec((co, 1), lambda i: (0, 0))]

    cout = chans[-1]
    if pooling:
        ho, wo = (h - 1) // 2 + 1, (w - 1) // 2 + 1                 # MaxPool2d(3, 2, 1) output size
        hwp = ho * wo
        q = jnp.arange(hwp, dtype=jnp.int32)
        src = 2 * (q // wo) * w + 2 * (q % wo)                      # flat source index per pooled pixel
        sel = (jnp.arange(hw, dtype=jnp.int32)[:, None] == src[None, :]).astype(jnp.float32)
        args.append(sel)
        in_specs.append(pl.BlockSpec((hw, hwp), lambda i: (0, 0)))
        oh, ow = ho, wo
    else:
        hwp, oh, ow = hw, h, w

    kernel = _make_fused_kernel(h, w, chans, tuple(acts), pooling)
    out = pl.pallas_call(
        kernel,
        out_shape=jax.ShapeDtypeStruct((n, cout, hwp), jnp.float32),
        grid_spec=pltpu.PrefetchScalarGridSpec(
            num_scalar_prefetch=0,
            grid=(n,),
            in_specs=in_specs,
            out_specs=pl.BlockSpec((1, cout, hwp), lambda i: (i, 0, 0)),
            scratch_shapes=[pltpu.VMEM((9 * max(chans[:-1]), hw), jnp.float32)],
        ),
        compiler_params=pltpu.CompilerParams(dimension_semantics=("parallel",)),
    )(*args)
    return out.reshape(n, cout, oh, ow)                             # flat-channel layout is NCHW already


# --------------------------------------------------------------------------- reference
def _reference_forward(image, layers, pooling, last_activation):
    x = image
    for idx, p in enumerate(layers):
        x = lax.conv_general_dilated(
            x, p["w"], (1, 1), ((1, 1), (1, 1)),
            dimension_numbers=("NCHW", "OIHW", "NCHW"),
            precision=lax.Precision.HIGHEST)
        x = x + p["b"][None, :, None, None]
        scale = p["gamma"] / jnp.sqrt(p["var"] + _BN_EPS)
        x = (x - p["mean"][None, :, None, None]) * scale[None, :, None, None] \
            + p["beta"][None, :, None, None]
        if idx == 2 and last_activation == "Sigmoid":
            x = jax.nn.sigmoid(x)
        else:
            x = jnp.maximum(x, 0.0)
    if pooling:
        x = lax.reduce_window(x, -jnp.inf, lax.max, (1, 1, 3, 3), (1, 1, 2, 2),
                              ((0, 0), (0, 0), (1, 1), (1, 1)))
    return x


def _init_params(key, input_chan, chans):
    layers = []
    cin = input_chan
    for cout in chans:
        key, kw, kb, kg, kbe, km, kv = jax.random.split(key, 7)
        layers.append(dict(
            w=0.2 * jax.random.normal(kw, (cout, cin, 3, 3), jnp.float32),
            b=0.1 * jax.random.normal(kb, (cout,), jnp.float32),
            gamma=1.0 + 0.1 * jax.random.normal(kg, (cout,), jnp.float32),
            beta=0.1 * jax.random.normal(kbe, (cout,), jnp.float32),
            mean=0.1 * jax.random.normal(km, (cout,), jnp.float32),
            var=jax.random.uniform(kv, (cout,), jnp.float32, 0.5, 1.5),
        ))
        cin = cout
    return layers


if __name__ == "__main__":
    root = jax.random.PRNGKey(0)
    xkey, pkey = jax.random.split(root)
    # ConvolutionCreationLayer(inputChan=3, chan1=8, chan2=16, chan3=16,
    #                          pooling=True, last_activation='ReLU')
    image = jax.random.normal(xkey, (2, 3, 16, 16), dtype=jnp.float32)
    layers = _init_params(pkey, input_chan=3, chans=(8, 16, 16))

    fwd = jax.jit(functools.partial(convolution_creation_layer,
                                    pooling=True, last_activation="ReLU"))
    out = jax.block_until_ready(fwd(image, layers))

    ref = jax.block_until_ready(
        _reference_forward(image, layers, pooling=True, last_activation="ReLU"))

    assert out.shape == (2, 16, 8, 8), out.shape
    max_err = float(jnp.max(jnp.abs(out - ref)))
    # Tolerance leaves headroom for default-precision (non-HIGHEST) f32 matmul lowering
    # on interpreter/fallback paths; the Mosaic TPU path is near-exact f32.
    assert jnp.allclose(out, ref, atol=2e-2, rtol=2e-2), max_err
    print("KERNEL_OK")
</pallas_src>

<mosaic_0001>
module attributes {stable_mosaic.version = 11 : i64} {
  func.func @kernel(%arg0: i32, %arg1: memref<1x3x256xf32, #tpu.memory_space<vmem>>, %arg2: memref<8x27xf32, #tpu.memory_space<vmem>>, %arg3: memref<8x1xf32, #tpu.memory_space<vmem>>, %arg4: memref<16x72xf32, #tpu.memory_space<vmem>>, %arg5: memref<16x1xf32, #tpu.memory_space<vmem>>, %arg6: memref<16x144xf32, #tpu.memory_space<vmem>>, %arg7: memref<16x1xf32, #tpu.memory_space<vmem>>, %arg8: memref<256x64xf32, #tpu.memory_space<vmem>>, %arg9: memref<1x16x64xf32, #tpu.memory_space<vmem>>, %arg10: memref<144x256xf32, #tpu.memory_space<vmem>>) attributes {dimension_semantics = [#tpu.dimension_semantics<parallel>], iteration_bounds = array<i64: 2>, scalar_prefetch = 0 : i64, scratch_operands = 1 : i64, tpu.core_type = #tpu.core_type<tc>, window_params = [{transform_indices = @transform_0, window_bounds = array<i64: 1, 3, 256>}, {pipeline_mode = #tpu.pipeline_mode<synchronous>, transform_indices = @transform_1, window_bounds = array<i64: 8, 27>}, {pipeline_mode = #tpu.pipeline_mode<synchronous>, transform_indices = @transform_2, window_bounds = array<i64: 8, 1>}, {pipeline_mode = #tpu.pipeline_mode<synchronous>, transform_indices = @transform_3, window_bounds = array<i64: 16, 72>}, {pipeline_mode = #tpu.pipeline_mode<synchronous>, transform_indices = @transform_4, window_bounds = array<i64: 16, 1>}, {pipeline_mode = #tpu.pipeline_mode<synchronous>, transform_indices = @transform_5, window_bounds = array<i64: 16, 144>}, {pipeline_mode = #tpu.pipeline_mode<synchronous>, transform_indices = @transform_6, window_bounds = array<i64: 16, 1>}, {pipeline_mode = #tpu.pipeline_mode<synchronous>, transform_indices = @transform_7, window_bounds = array<i64: 256, 64>}, {transform_indices = @transform_8, window_bounds = array<i64: 1, 16, 64>}]} {
    %0 = tpu.iota {dimensions = array<i32: 1>} : vector<1x256xi32>
    %c15_i32 = arith.constant 15 : i32
    %1 = vector.broadcast %c15_i32 : i32 to vector<1x256xi32>
    %2 = arith.andi %0, %1 : vector<1x256xi32>
    %c0_i32 = arith.constant 0 : i32
    %3 = vector.broadcast %c0_i32 : i32 to vector<1x256xi32>
    %4 = arith.cmpi ne, %2, %3 : vector<1x256xi32>
    %c15_i32_0 = arith.constant 15 : i32
    %5 = vector.broadcast %c15_i32_0 : i32 to vector<1x256xi32>
    %6 = arith.cmpi ne, %2, %5 : vector<1x256xi32>
    %c0 = arith.constant 0 : index
    %c0_1 = arith.constant 0 : index
    %c0_2 = arith.constant 0 : index
    %7 = vector.load %arg1[%c0, %c0_1, %c0_2] : memref<1x3x256xf32, #tpu.memory_space<vmem>>, vector<1x3x256xf32>
    %8 = vector.shape_cast %7 : vector<1x3x256xf32> to vector<3x256xf32>
    %cst = arith.constant 0.000000e+00 : f32
    %9 = vector.broadcast %cst : f32 to vector<3x17xf32>
    %10 = vector.extract_strided_slice %8 {offsets = [0, 0], sizes = [3, 239], strides = [1, 1]} : vector<3x256xf32> to vector<3x239xf32>
    %11 = tpu.concatenate %9, %10 in 1 : vector<3x17xf32>, vector<3x239xf32> -> vector<3x256xf32>
    %cst_3 = arith.constant 0.000000e+00 : f32
    %12 = vector.shape_cast %4 : vector<1x256xi1> to vector<1x256xi1>
    %13 = vector.broadcast %12 : vector<1x256xi1> to vector<3x256xi1>
    %14 = vector.broadcast %cst_3 : f32 to vector<3x256xf32>
    %15 = arith.select %13, %11, %14 : vector<3x256xi1>, vector<3x256xf32>
    %c0_4 = arith.constant 0 : index
    %c0_5 = arith.constant 0 : index
    %16 = vector.load %arg10[%c0_4, %c0_5] : memref<144x256xf32, #tpu.memory_space<vmem>>, vector<3x256xf32>
    tpu.vector_store %arg10[%c0_4, %c0_5], %15 {strides = array<i32>} : memref<144x256xf32, #tpu.memory_space<vmem>>, vector<3x256xf32>,
    %cst_6 = arith.constant 0.000000e+00 : f32
    %17 = vector.broadcast %cst_6 : f32 to vector<3x16xf32>
    %18 = vector.extract_strided_slice %8 {offsets = [0, 0], sizes = [3, 240], strides = [1, 1]} : vector<3x256xf32> to vector<3x240xf32>
    %19 = tpu.concatenate %17, %18 in 1 : vector<3x16xf32>, vector<3x240xf32> -> vector<3x256xf32>
    %c3 = arith.constant 3 : index
    %c0_7 = arith.constant 0 : index
    %20 = vector.load %arg10[%c3, %c0_7] : memref<144x256xf32, #tpu.memory_space<vmem>>, vector<3x256xf32>
    tpu.vector_store %arg10[%c3, %c0_7], %19 {strides = array<i32>} : memref<144x256xf32, #tpu.memory_space<vmem>>, vector<3x256xf32>,
    %cst_8 = arith.constant 0.000000e+00 : f32
    %21 = vector.broadcast %cst_8 : f32 to vector<3x15xf32>
    %22 = vector.extract_strided_slice %8 {offsets = [0, 0], sizes = [3, 241], strides = [1, 1]} : vector<3x256xf32> to vector<3x241xf32>
    %23 = tpu.concatenate %21, %22 in 1 : vector<3x15xf32>, vector<3x241xf32> -> vector<3x256xf32>
    %cst_9 = arith.constant 0.000000e+00 : f32
    %24 = vector.shape_cast %6 : vector<1x256xi1> to vector<1x256xi1>
    %25 = vector.broadcast %24 : vector<1x256xi1> to vector<3x256xi1>
    %26 = vector.broadcast %cst_9 : f32 to vector<3x256xf32>
    %27 = arith.select %25, %23, %26 : vector<3x256xi1>, vector<3x256xf32>
    %c6 = arith.constant 6 : index
    %c0_10 = arith.constant 0 : index
    %28 = vector.load %arg10[%c6, %c0_10] : memref<144x256xf32, #tpu.memory_space<vmem>>, vector<3x256xf32>
    tpu.vector_store %arg10[%c6, %c0_10], %27 {strides = array<i32>} : memref<144x256xf32, #tpu.memory_space<vmem>>, vector<3x256xf32>,
    %cst_11 = arith.constant 0.000000e+00 : f32
    %29 = vector.broadcast %cst_11 : f32 to vector<3x1xf32>
    %30 = vector.extract_strided_slice %8 {offsets = [0, 0], sizes = [3, 255], strides = [1, 1]} : vector<3x256xf32> to vector<3x255xf32>
    %31 = tpu.concatenate %29, %30 in 1 : vector<3x1xf32>, vector<3x255xf32> -> vector<3x256xf32>
    %cst_12 = arith.constant 0.000000e+00 : f32
    %32 = vector.shape_cast %4 : vector<1x256xi1> to vector<1x256xi1>
    %33 = vector.broadcast %32 : vector<1x256xi1> to vector<3x256xi1>
    %34 = vector.broadcast %cst_12 : f32 to vector<3x256xf32>
    %35 = arith.select %33, %31, %34 : vector<3x256xi1>, vector<3x256xf32>
    %c9 = arith.constant 9 : index
    %c0_13 = arith.constant 0 : index
    %36 = vector.load %arg10[%c9, %c0_13] : memref<144x256xf32, #tpu.memory_space<vmem>>, vector<3x256xf32>
    tpu.vector_store %arg10[%c9, %c0_13], %35 {strides = array<i32>} : memref<144x256xf32, #tpu.memory_space<vmem>>, vector<3x256xf32>,
    %c12 = arith.constant 12 : index
    %c0_14 = arith.constant 0 : index
    %37 = vector.load %arg10[%c12, %c0_14] : memref<144x256xf32, #tpu.memory_space<vmem>>, vector<3x256xf32>
    tpu.vector_store %arg10[%c12, %c0_14], %8 {strides = array<i32>} : memref<144x256xf32, #tpu.memory_space<vmem>>, vector<3x256xf32>,
    %38 = vector.extract_strided_slice %8 {offsets = [0, 1], sizes = [3, 255], strides = [1, 1]} : vector<3x256xf32> to vector<3x255xf32>
    %cst_15 = arith.constant 0.000000e+00 : f32
    %39 = vector.broadcast %cst_15 : f32 to vector<3x1xf32>
    %40 = tpu.concatenate %38, %39 in 1 : vector<3x255xf32>, vector<3x1xf32> -> vector<3x256xf32>
    %cst_16 = arith.constant 0.000000e+00 : f32
    %41 = vector.shape_cast %6 : vector<1x256xi1> to vector<1x256xi1>
    %42 = vector.broadcast %41 : vector<1x256xi1> to vector<3x256xi1>
    %43 = vector.broadcast %cst_16 : f32 to vector<3x256xf32>
    %44 = arith.select %42, %40, %43 : vector<3x256xi1>, vector<3x256xf32>
    %c15 = arith.constant 15 : index
    %c0_17 = arith.constant 0 : index
    %45 = vector.load %arg10[%c15, %c0_17] : memref<144x256xf32, #tpu.memory_space<vmem>>, vector<3x256xf32>
    tpu.vector_store %arg10[%c15, %c0_17], %44 {strides = array<i32>} : memref<144x256xf32, #tpu.memory_space<vmem>>, vector<3x256xf32>,
    %46 = vector.extract_strided_slice %8 {offsets = [0, 15], sizes = [3, 241], strides = [1, 1]} : vector<3x256xf32> to vector<3x241xf32>
    %cst_18 = arith.constant 0.000000e+00 : f32
    %47 = vector.broadcast %cst_18 : f32 to vector<3x15xf32>
    %48 = tpu.concatenate %46, %47 in 1 : vector<3x241xf32>, vector<3x15xf32> -> vector<3x256xf32>
    %cst_19 = arith.constant 0.000000e+00 : f32
    %49 = vector.shape_cast %4 : vector<1x256xi1> to vector<1x256xi1>
    %50 = vector.broadcast %49 : vector<1x256xi1> to vector<3x256xi1>
    %51 = vector.broadcast %cst_19 : f32 to vector<3x256xf32>
    %52 = arith.select %50, %48, %51 : vector<3x256xi1>, vector<3x256xf32>
    %c18 = arith.constant 18 : index
    %c0_20 = arith.constant 0 : index
    %53 = vector.load %arg10[%c18, %c0_20] : memref<144x256xf32, #tpu.memory_space<vmem>>, vector<3x256xf32>
    tpu.vector_store %arg10[%c18, %c0_20], %52 {strides = array<i32>} : memref<144x256xf32, #tpu.memory_space<vmem>>, vector<3x256xf32>,
    %54 = vector.extract_strided_slice %8 {offsets = [0, 16], sizes = [3, 240], strides = [1, 1]} : vector<3x256xf32> to vector<3x240xf32>
    %cst_21 = arith.constant 0.000000e+00 : f32
    %55 = vector.broadcast %cst_21 : f32 to vector<3x16xf32>
    %56 = tpu.concatenate %54, %55 in 1 : vector<3x240xf32>, vector<3x16xf32> -> vector<3x256xf32>
    %c21 = arith.constant 21 : index
    %c0_22 = arith.constant 0 : index
    %57 = vector.load %arg10[%c21, %c0_22] : memref<144x256xf32, #tpu.memory_space<vmem>>, vector<3x256xf32>
    tpu.vector_store %arg10[%c21, %c0_22], %56 {strides = array<i32>} : memref<144x256xf32, #tpu.memory_space<vmem>>, vector<3x256xf32>,
    %58 = vector.extract_strided_slice %8 {offsets = [0, 17], sizes = [3, 239], strides = [1, 1]} : vector<3x256xf32> to vector<3x239xf32>
    %cst_23 = arith.constant 0.000000e+00 : f32
    %59 = vector.broadcast %cst_23 : f32 to vector<3x17xf32>
    %60 = tpu.concatenate %58, %59 in 1 : vector<3x239xf32>, vector<3x17xf32> -> vector<3x256xf32>
    %cst_24 = arith.constant 0.000000e+00 : f32
    %61 = vector.shape_cast %6 : vector<1x256xi1> to vector<1x256xi1>
    %62 = vector.broadcast %61 : vector<1x256xi1> to vector<3x256xi1>
    %63 = vector.broadcast %cst_24 : f32 to vector<3x256xf32>
    %64 = arith.select %62, %60, %63 : vector<3x256xi1>, vector<3x256xf32>
    %c24 = arith.constant 24 : index
    %c0_25 = arith.constant 0 : index
    %65 = vector.load %arg10[%c24, %c0_25] : memref<144x256xf32, #tpu.memory_space<vmem>>, vector<3x256xf32>
    tpu.vector_store %arg10[%c24, %c0_25], %64 {strides = array<i32>} : memref<144x256xf32, #tpu.memory_space<vmem>>, vector<3x256xf32>,
    %c0_26 = arith.constant 0 : index
    %c0_27 = arith.constant 0 : index
    %66 = vector.load %arg2[%c0_26, %c0_27] : memref<8x27xf32, #tpu.memory_space<vmem>>, vector<8x27xf32>
    %c0_28 = arith.constant 0 : index
    %c0_29 = arith.constant 0 : index
    %67 = vector.load %arg10[%c0_28, %c0_29] : memref<144x256xf32, #tpu.memory_space<vmem>>, vector<27x256xf32>
    %cst_30 = arith.constant dense<0.000000e+00> : vector<8x256xf32>
    %68 = tpu.matmul %66, %67, %cst_30 {dimension_numbers = #tpu.dot_dimension_numbers<[1], [0], [0], [1], [0, 0, 1, 1], [], []>} : vector<8x27xf32>, vector<27x256xf32>, vector<8x256xf32> -> vector<8x256xf32>
    %c0_31 = arith.constant 0 : index
    %c0_32 = arith.constant 0 : index
    %69 = vector.load %arg3[%c0_31, %c0_32] : memref<8x1xf32, #tpu.memory_space<vmem>>, vector<8x1xf32>
    %70 = vector.broadcast %69 : vector<8x1xf32> to vector<8x256xf32>
    %71 = arith.addf %68, %70 : vector<8x256xf32>
    %cst_33 = arith.constant 0.000000e+00 : f32
    %72 = vector.broadcast %cst_33 : f32 to vector<8x256xf32>
    %73 = arith.maximumf %71, %72 : vector<8x256xf32>
    %cst_34 = arith.constant 0.000000e+00 : f32
    %74 = vector.broadcast %cst_34 : f32 to vector<8x17xf32>
    %75 = vector.extract_strided_slice %73 {offsets = [0, 0], sizes = [8, 239], strides = [1, 1]} : vector<8x256xf32> to vector<8x239xf32>
    %76 = tpu.concatenate %74, %75 in 1 : vector<8x17xf32>, vector<8x239xf32> -> vector<8x256xf32>
    %cst_35 = arith.constant 0.000000e+00 : f32
    %77 = vector.shape_cast %4 : vector<1x256xi1> to vector<1x256xi1>
    %78 = vector.broadcast %77 : vector<1x256xi1> to vector<8x256xi1>
    %79 = vector.broadcast %cst_35 : f32 to vector<8x256xf32>
    %80 = arith.select %78, %76, %79 : vector<8x256xi1>, vector<8x256xf32>
    %c0_36 = arith.constant 0 : index
    %c0_37 = arith.constant 0 : index
    %81 = vector.load %arg10[%c0_36, %c0_37] : memref<144x256xf32, #tpu.memory_space<vmem>>, vector<8x256xf32>
    tpu.vector_store %arg10[%c0_36, %c0_37], %80 {strides = array<i32>} : memref<144x256xf32, #tpu.memory_space<vmem>>, vector<8x256xf32>,
    %cst_38 = arith.constant 0.000000e+00 : f32
    %82 = vector.broadcast %cst_38 : f32 to vector<8x16xf32>
    %83 = vector.extract_strided_slice %73 {offsets = [0, 0], sizes = [8, 240], strides = [1, 1]} : vector<8x256xf32> to vector<8x240xf32>
    %84 = tpu.concatenate %82, %83 in 1 : vector<8x16xf32>, vector<8x240xf32> -> vector<8x256xf32>
    %c8 = arith.constant 8 : index
    %c0_39 = arith.constant 0 : index
    %85 = vector.load %arg10[%c8, %c0_39] : memref<144x256xf32, #tpu.memory_space<vmem>>, vector<8x256xf32>
    tpu.vector_store %arg10[%c8, %c0_39], %84 {strides = array<i32>} : memref<144x256xf32, #tpu.memory_space<vmem>>, vector<8x256xf32>,
    %cst_40 = arith.constant 0.000000e+00 : f32
    %86 = vector.broadcast %cst_40 : f32 to vector<8x15xf32>
    %87 = vector.extract_strided_slice %73 {offsets = [0, 0], sizes = [8, 241], strides = [1, 1]} : vector<8x256xf32> to vector<8x241xf32>
    %88 = tpu.concatenate %86, %87 in 1 : vector<8x15xf32>, vector<8x241xf32> -> vector<8x256xf32>
    %cst_41 = arith.constant 0.000000e+00 : f32
    %89 = vector.shape_cast %6 : vector<1x256xi1> to vector<1x256xi1>
    %90 = vector.broadcast %89 : vector<1x256xi1> to vector<8x256xi1>
    %91 = vector.broadcast %cst_41 : f32 to vector<8x256xf32>
    %92 = arith.select %90, %88, %91 : vector<8x256xi1>, vector<8x256xf32>
    %c16 = arith.constant 16 : index
    %c0_42 = arith.constant 0 : index
    %93 = vector.load %arg10[%c16, %c0_42] : memref<144x256xf32, #tpu.memory_space<vmem>>, vector<8x256xf32>
    tpu.vector_store %arg10[%c16, %c0_42], %92 {strides = array<i32>} : memref<144x256xf32, #tpu.memory_space<vmem>>, vector<8x256xf32>,
    %cst_43 = arith.constant 0.000000e+00 : f32
    %94 = vector.broadcast %cst_43 : f32 to vector<8x1xf32>
    %95 = vector.extract_strided_slice %73 {offsets = [0, 0], sizes = [8, 255], strides = [1, 1]} : vector<8x256xf32> to vector<8x255xf32>
    %96 = tpu.concatenate %94, %95 in 1 : vector<8x1xf32>, vector<8x255xf32> -> vector<8x256xf32>
    %cst_44 = arith.constant 0.000000e+00 : f32
    %97 = vector.shape_cast %4 : vector<1x256xi1> to vector<1x256xi1>
    %98 = vector.broadcast %97 : vector<1x256xi1> to vector<8x256xi1>
    %99 = vector.broadcast %cst_44 : f32 to vector<8x256xf32>
    %100 = arith.select %98, %96, %99 : vector<8x256xi1>, vector<8x256xf32>
    %c24_45 = arith.constant 24 : index
    %c0_46 = arith.constant 0 : index
    %101 = vector.load %arg10[%c24_45, %c0_46] : memref<144x256xf32, #tpu.memory_space<vmem>>, vector<8x256xf32>
    tpu.vector_store %arg10[%c24_45, %c0_46], %100 {strides = array<i32>} : memref<144x256xf32, #tpu.memory_space<vmem>>, vector<8x256xf32>,
    %c32 = arith.constant 32 : index
    %c0_47 = arith.constant 0 : index
    %102 = vector.load %arg10[%c32, %c0_47] : memref<144x256xf32, #tpu.memory_space<vmem>>, vector<8x256xf32>
    tpu.vector_store %arg10[%c32, %c0_47], %73 {strides = array<i32>} : memref<144x256xf32, #tpu.memory_space<vmem>>, vector<8x256xf32>,
    %103 = vector.extract_strided_slice %73 {offsets = [0, 1], sizes = [8, 255], strides = [1, 1]} : vector<8x256xf32> to vector<8x255xf32>
    %cst_48 = arith.constant 0.000000e+00 : f32
    %104 = vector.broadcast %cst_48 : f32 to vector<8x1xf32>
    %105 = tpu.concatenate %103, %104 in 1 : vector<8x255xf32>, vector<8x1xf32> -> vector<8x256xf32>
    %cst_49 = arith.constant 0.000000e+00 : f32
    %106 = vector.shape_cast %6 : vector<1x256xi1> to vector<1x256xi1>
    %107 = vector.broadcast %106 : vector<1x256xi1> to vector<8x256xi1>
    %108 = vector.broadcast %cst_49 : f32 to vector<8x256xf32>
    %109 = arith.select %107, %105, %108 : vector<8x256xi1>, vector<8x256xf32>
    %c40 = arith.constant 40 : index
    %c0_50 = arith.constant 0 : index
    %110 = vector.load %arg10[%c40, %c0_50] : memref<144x256xf32, #tpu.memory_space<vmem>>, vector<8x256xf32>
    tpu.vector_store %arg10[%c40, %c0_50], %109 {strides = array<i32>} : memref<144x256xf32, #tpu.memory_space<vmem>>, vector<8x256xf32>,
    %111 = vector.extract_strided_slice %73 {offsets = [0, 15], sizes = [8, 241], strides = [1, 1]} : vector<8x256xf32> to vector<8x241xf32>
    %cst_51 = arith.constant 0.000000e+00 : f32
    %112 = vector.broadcast %cst_51 : f32 to vector<8x15xf32>
    %113 = tpu.concatenate %111, %112 in 1 : vector<8x241xf32>, vector<8x15xf32> -> vector<8x256xf32>
    %cst_52 = arith.constant 0.000000e+00 : f32
    %114 = vector.shape_cast %4 : vector<1x256xi1> to vector<1x256xi1>
    %115 = vector.broadcast %114 : vector<1x256xi1> to vector<8x256xi1>
    %116 = vector.broadcast %cst_52 : f32 to vector<8x256xf32>
    %117 = arith.select %115, %113, %116 : vector<8x256xi1>, vector<8x256xf32>
    %c48 = arith.constant 48 : index
    %c0_53 = arith.constant 0 : index
    %118 = vector.load %arg10[%c48, %c0_53] : memref<144x256xf32, #tpu.memory_space<vmem>>, vector<8x256xf32>
    tpu.vector_store %arg10[%c48, %c0_53], %117 {strides = array<i32>} : memref<144x256xf32, #tpu.memory_space<vmem>>, vector<8x256xf32>,
    %119 = vector.extract_strided_slice %73 {offsets = [0, 16], sizes = [8, 240], strides = [1, 1]} : vector<8x256xf32> to vector<8x240xf32>
    %cst_54 = arith.constant 0.000000e+00 : f32
    %120 = vector.broadcast %cst_54 : f32 to vector<8x16xf32>
    %121 = tpu.concatenate %119, %120 in 1 : vector<8x240xf32>, vector<8x16xf32> -> vector<8x256xf32>
    %c56 = arith.constant 56 : index
    %c0_55 = arith.constant 0 : index
    %122 = vector.load %arg10[%c56, %c0_55] : memref<144x256xf32, #tpu.memory_space<vmem>>, vector<8x256xf32>
    tpu.vector_store %arg10[%c56, %c0_55], %121 {strides = array<i32>} : memref<144x256xf32, #tpu.memory_space<vmem>>, vector<8x256xf32>,
    %123 = vector.extract_strided_slice %73 {offsets = [0, 17], sizes = [8, 239], strides = [1, 1]} : vector<8x256xf32> to vector<8x239xf32>
    %cst_56 = arith.constant 0.000000e+00 : f32
    %124 = vector.broadcast %cst_56 : f32 to vector<8x17xf32>
    %125 = tpu.concatenate %123, %124 in 1 : vector<8x239xf32>, vector<8x17xf32> -> vector<8x256xf32>
    %cst_57 = arith.constant 0.000000e+00 : f32
    %126 = vector.shape_cast %6 : vector<1x256xi1> to vector<1x256xi1>
    %127 = vector.broadcast %126 : vector<1x256xi1> to vector<8x256xi1>
    %128 = vector.broadcast %cst_57 : f32 to vector<8x256xf32>
    %129 = arith.select %127, %125, %128 : vector<8x256xi1>, vector<8x256xf32>
    %c64 = arith.constant 64 : index
    %c0_58 = arith.constant 0 : index
    %130 = vector.load %arg10[%c64, %c0_58] : memref<144x256xf32, #tpu.memory_space<vmem>>, vector<8x256xf32>
    tpu.vector_store %arg10[%c64, %c0_58], %129 {strides = array<i32>} : memref<144x256xf32, #tpu.memory_space<vmem>>, vector<8x256xf32>,
    %c0_59 = arith.constant 0 : index
    %c0_60 = arith.constant 0 : index
    %131 = vector.load %arg4[%c0_59, %c0_60] : memref<16x72xf32, #tpu.memory_space<vmem>>, vector<16x72xf32>
    %c0_61 = arith.constant 0 : index
    %c0_62 = arith.constant 0 : index
    %132 = vector.load %arg10[%c0_61, %c0_62] : memref<144x256xf32, #tpu.memory_space<vmem>>, vector<72x256xf32>
    %cst_63 = arith.constant dense<0.000000e+00> : vector<16x256xf32>
    %133 = tpu.matmul %131, %132, %cst_63 {dimension_numbers = #tpu.dot_dimension_numbers<[1], [0], [0], [1], [0, 0, 1, 1], [], []>} : vector<16x72xf32>, vector<72x256xf32>, vector<16x256xf32> -> vector<16x256xf32>
    %c0_64 = arith.constant 0 : index
    %c0_65 = arith.constant 0 : index
    %134 = vector.load %arg5[%c0_64, %c0_65] : memref<16x1xf32, #tpu.memory_space<vmem>>, vector<16x1xf32>
    %135 = vector.broadcast %134 : vector<16x1xf32> to vector<16x256xf32>
    %136 = arith.addf %133, %135 : vector<16x256xf32>
    %cst_66 = arith.constant 0.000000e+00 : f32
    %137 = vector.broadcast %cst_66 : f32 to vector<16x256xf32>
    %138 = arith.maximumf %136, %137 : vector<16x256xf32>
    %cst_67 = arith.constant 0.000000e+00 : f32
    %139 = vector.broadcast %cst_67 : f32 to vector<16x17xf32>
    %140 = vector.extract_strided_slice %138 {offsets = [0, 0], sizes = [16, 239], strides = [1, 1]} : vector<16x256xf32> to vector<16x239xf32>
    %141 = tpu.concatenate %139, %140 in 1 : vector<16x17xf32>, vector<16x239xf32> -> vector<16x256xf32>
    %cst_68 = arith.constant 0.000000e+00 : f32
    %142 = vector.shape_cast %4 : vector<1x256xi1> to vector<1x256xi1>
    %143 = vector.broadcast %142 : vector<1x256xi1> to vector<16x256xi1>
    %144 = vector.broadcast %cst_68 : f32 to vector<16x256xf32>
    %145 = arith.select %143, %141, %144 : vector<16x256xi1>, vector<16x256xf32>
    %c0_69 = arith.constant 0 : index
    %c0_70 = arith.constant 0 : index
    %146 = vector.load %arg10[%c0_69, %c0_70] : memref<144x256xf32, #tpu.memory_space<vmem>>, vector<16x256xf32>
    tpu.vector_store %arg10[%c0_69, %c0_70], %145 {strides = array<i32>} : memref<144x256xf32, #tpu.memory_space<vmem>>, vector<16x256xf32>,
    %cst_71 = arith.constant 0.000000e+00 : f32
    %147 = vector.broadcast %cst_71 : f32 to vector<16x16xf32>
    %148 = vector.extract_strided_slice %138 {offsets = [0, 0], sizes = [16, 240], strides = [1, 1]} : vector<16x256xf32> to vector<16x240xf32>
    %149 = tpu.concatenate %147, %148 in 1 : vector<16x16xf32>, vector<16x240xf32> -> vector<16x256xf32>
    %c16_72 = arith.constant 16 : index
    %c0_73 = arith.constant 0 : index
    %150 = vector.load %arg10[%c16_72, %c0_73] : memref<144x256xf32, #tpu.memory_space<vmem>>, vector<16x256xf32>
    tpu.vector_store %arg10[%c16_72, %c0_73], %149 {strides = array<i32>} : memref<144x256xf32, #tpu.memory_space<vmem>>, vector<16x256xf32>,
    %cst_74 = arith.constant 0.000000e+00 : f32
    %151 = vector.broadcast %cst_74 : f32 to vector<16x15xf32>
    %152 = vector.extract_strided_slice %138 {offsets = [0, 0], sizes = [16, 241], strides = [1, 1]} : vector<16x256xf32> to vector<16x241xf32>
    %153 = tpu.concatenate %151, %152 in 1 : vector<16x15xf32>, vector<16x241xf32> -> vector<16x256xf32>
    %cst_75 = arith.constant 0.000000e+00 : f32
    %154 = vector.shape_cast %6 : vector<1x256xi1> to vector<1x256xi1>
    %155 = vector.broadcast %154 : vector<1x256xi1> to vector<16x256xi1>
    %156 = vector.broadcast %cst_75 : f32 to vector<16x256xf32>
    %157 = arith.select %155, %153, %156 : vector<16x256xi1>, vector<16x256xf32>
    %c32_76 = arith.constant 32 : index
    %c0_77 = arith.constant 0 : index
    %158 = vector.load %arg10[%c32_76, %c0_77] : memref<144x256xf32, #tpu.memory_space<vmem>>, vector<16x256xf32>
    tpu.vector_store %arg10[%c32_76, %c0_77], %157 {strides = array<i32>} : memref<144x256xf32, #tpu.memory_space<vmem>>, vector<16x256xf32>,
    %cst_78 = arith.constant 0.000000e+00 : f32
    %159 = vector.broadcast %cst_78 : f32 to vector<16x1xf32>
    %160 = vector.extract_strided_slice %138 {offsets = [0, 0], sizes = [16, 255], strides = [1, 1]} : vector<16x256xf32> to vector<16x255xf32>
    %161 = tpu.concatenate %159, %160 in 1 : vector<16x1xf32>, vector<16x255xf32> -> vector<16x256xf32>
    %cst_79 = arith.constant 0.000000e+00 : f32
    %162 = vector.shape_cast %4 : vector<1x256xi1> to vector<1x256xi1>
    %163 = vector.broadcast %162 : vector<1x256xi1> to vector<16x256xi1>
    %164 = vector.broadcast %cst_79 : f32 to vector<16x256xf32>
    %165 = arith.select %163, %161, %164 : vector<16x256xi1>, vector<16x256xf32>
    %c48_80 = arith.constant 48 : index
    %c0_81 = arith.constant 0 : index
    %166 = vector.load %arg10[%c48_80, %c0_81] : memref<144x256xf32, #tpu.memory_space<vmem>>, vector<16x256xf32>
    tpu.vector_store %arg10[%c48_80, %c0_81], %165 {strides = array<i32>} : memref<144x256xf32, #tpu.memory_space<vmem>>, vector<16x256xf32>,
    %c64_82 = arith.constant 64 : index
    %c0_83 = arith.constant 0 : index
    %167 = vector.load %arg10[%c64_82, %c0_83] : memref<144x256xf32, #tpu.memory_space<vmem>>, vector<16x256xf32>
    tpu.vector_store %arg10[%c64_82, %c0_83], %138 {strides = array<i32>} : memref<144x256xf32, #tpu.memory_space<vmem>>, vector<16x256xf32>,
    %168 = vector.extract_strided_slice %138 {offsets = [0, 1], sizes = [16, 255], strides = [1, 1]} : vector<16x256xf32> to vector<16x255xf32>
    %cst_84 = arith.constant 0.000000e+00 : f32
    %169 = vector.broadcast %cst_84 : f32 to vector<16x1xf32>
    %170 = tpu.concatenate %168, %169 in 1 : vector<16x255xf32>, vector<16x1xf32> -> vector<16x256xf32>
    %cst_85 = arith.constant 0.000000e+00 : f32
    %171 = vector.shape_cast %6 : vector<1x256xi1> to vector<1x256xi1>
    %172 = vector.broadcast %171 : vector<1x256xi1> to vector<16x256xi1>
    %173 = vector.broadcast %cst_85 : f32 to vector<16x256xf32>
    %174 = arith.select %172, %170, %173 : vector<16x256xi1>, vector<16x256xf32>
    %c80 = arith.constant 80 : index
    %c0_86 = arith.constant 0 : index
    %175 = vector.load %arg10[%c80, %c0_86] : memref<144x256xf32, #tpu.memory_space<vmem>>, vector<16x256xf32>
    tpu.vector_store %arg10[%c80, %c0_86], %174 {strides = array<i32>} : memref<144x256xf32, #tpu.memory_space<vmem>>, vector<16x256xf32>,
    %176 = vector.extract_strided_slice %138 {offsets = [0, 15], sizes = [16, 241], strides = [1, 1]} : vector<16x256xf32> to vector<16x241xf32>
    %cst_87 = arith.constant 0.000000e+00 : f32
    %177 = vector.broadcast %cst_87 : f32 to vector<16x15xf32>
    %178 = tpu.concatenate %176, %177 in 1 : vector<16x241xf32>, vector<16x15xf32> -> vector<16x256xf32>
    %cst_88 = arith.constant 0.000000e+00 : f32
    %179 = vector.shape_cast %4 : vector<1x256xi1> to vector<1x256xi1>
    %180 = vector.broadcast %179 : vector<1x256xi1> to vector<16x256xi1>
    %181 = vector.broadcast %cst_88 : f32 to vector<16x256xf32>
    %182 = arith.select %180, %178, %181 : vector<16x256xi1>, vector<16x256xf32>
    %c96 = arith.constant 96 : index
    %c0_89 = arith.constant 0 : index
    %183 = vector.load %arg10[%c96, %c0_89] : memref<144x256xf32, #tpu.memory_space<vmem>>, vector<16x256xf32>
    tpu.vector_store %arg10[%c96, %c0_89], %182 {strides = array<i32>} : memref<144x256xf32, #tpu.memory_space<vmem>>, vector<16x256xf32>,
    %184 = vector.extract_strided_slice %138 {offsets = [0, 16], sizes = [16, 240], strides = [1, 1]} : vector<16x256xf32> to vector<16x240xf32>
    %cst_90 = arith.constant 0.000000e+00 : f32
    %185 = vector.broadcast %cst_90 : f32 to vector<16x16xf32>
    %186 = tpu.concatenate %184, %185 in 1 : vector<16x240xf32>, vector<16x16xf32> -> vector<16x256xf32>
    %c112 = arith.constant 112 : index
    %c0_91 = arith.constant 0 : index
    %187 = vector.load %arg10[%c112, %c0_91] : memref<144x256xf32, #tpu.memory_space<vmem>>, vector<16x256xf32>
    tpu.vector_store %arg10[%c112, %c0_91], %186 {strides = array<i32>} : memref<144x256xf32, #tpu.memory_space<vmem>>, vector<16x256xf32>,
    %188 = vector.extract_strided_slice %138 {offsets = [0, 17], sizes = [16, 239], strides = [1, 1]} : vector<16x256xf32> to vector<16x239xf32>
    %cst_92 = arith.constant 0.000000e+00 : f32
    %189 = vector.broadcast %cst_92 : f32 to vector<16x17xf32>
    %190 = tpu.concatenate %188, %189 in 1 : vector<16x239xf32>, vector<16x17xf32> -> vector<16x256xf32>
    %cst_93 = arith.constant 0.000000e+00 : f32
    %191 = vector.shape_cast %6 : vector<1x256xi1> to vector<1x256xi1>
    %192 = vector.broadcast %191 : vector<1x256xi1> to vector<16x256xi1>
    %193 = vector.broadcast %cst_93 : f32 to vector<16x256xf32>
    %194 = arith.select %192, %190, %193 : vector<16x256xi1>, vector<16x256xf32>
    %c128 = arith.constant 128 : index
    %c0_94 = arith.constant 0 : index
    %195 = vector.load %arg10[%c128, %c0_94] : memref<144x256xf32, #tpu.memory_space<vmem>>, vector<16x256xf32>
    tpu.vector_store %arg10[%c128, %c0_94], %194 {strides = array<i32>} : memref<144x256xf32, #tpu.memory_space<vmem>>, vector<16x256xf32>,
    %c0_95 = arith.constant 0 : index
    %c0_96 = arith.constant 0 : index
    %196 = vector.load %arg6[%c0_95, %c0_96] : memref<16x144xf32, #tpu.memory_space<vmem>>, vector<16x144xf32>
    %c0_97 = arith.constant 0 : index
    %c0_98 = arith.constant 0 : index
    %197 = vector.load %arg10[%c0_97, %c0_98] : memref<144x256xf32, #tpu.memory_space<vmem>>, vector<144x256xf32>
    %cst_99 = arith.constant dense<0.000000e+00> : vector<16x256xf32>
    %198 = tpu.matmul %196, %197, %cst_99 {dimension_numbers = #tpu.dot_dimension_numbers<[1], [0], [0], [1], [0, 0, 1, 1], [], []>} : vector<16x144xf32>, vector<144x256xf32>, vector<16x256xf32> -> vector<16x256xf32>
    %c0_100 = arith.constant 0 : index
    %c0_101 = arith.constant 0 : index
    %199 = vector.load %arg7[%c0_100, %c0_101] : memref<16x1xf32, #tpu.memory_space<vmem>>, vector<16x1xf32>
    %200 = vector.broadcast %199 : vector<16x1xf32> to vector<16x256xf32>
    %201 = arith.addf %198, %200 : vector<16x256xf32>
    %cst_102 = arith.constant 0.000000e+00 : f32
    %202 = vector.broadcast %cst_102 : f32 to vector<16x256xf32>
    %203 = arith.maximumf %201, %202 : vector<16x256xf32>
    %cst_103 = arith.constant -1.000000e+30 : f32
    %204 = vector.broadcast %cst_103 : f32 to vector<16x17xf32>
    %205 = vector.extract_strided_slice %203 {offsets = [0, 0], sizes = [16, 239], strides = [1, 1]} : vector<16x256xf32> to vector<16x239xf32>
    %206 = tpu.concatenate %204, %205 in 1 : vector<16x17xf32>, vector<16x239xf32> -> vector<16x256xf32>
    %cst_104 = arith.constant -1.000000e+30 : f32
    %207 = vector.shape_cast %4 : vector<1x256xi1> to vector<1x256xi1>
    %208 = vector.broadcast %207 : vector<1x256xi1> to vector<16x256xi1>
    %209 = vector.broadcast %cst_104 : f32 to vector<16x256xf32>
    %210 = arith.select %208, %206, %209 : vector<16x256xi1>, vector<16x256xf32>
    %cst_105 = arith.constant -1.000000e+30 : f32
    %211 = vector.broadcast %cst_105 : f32 to vector<16x16xf32>
    %212 = vector.extract_strided_slice %203 {offsets = [0, 0], sizes = [16, 240], strides = [1, 1]} : vector<16x256xf32> to vector<16x240xf32>
    %213 = tpu.concatenate %211, %212 in 1 : vector<16x16xf32>, vector<16x240xf32> -> vector<16x256xf32>
    %214 = arith.maximumf %210, %213 : vector<16x256xf32>
    %cst_106 = arith.constant -1.000000e+30 : f32
    %215 = vector.broadcast %cst_106 : f32 to vector<16x15xf32>
    %216 = vector.extract_strided_slice %203 {offsets = [0, 0], sizes = [16, 241], strides = [1, 1]} : vector<16x256xf32> to vector<16x241xf32>
    %217 = tpu.concatenate %215, %216 in 1 : vector<16x15xf32>, vector<16x241xf32> -> vector<16x256xf32>
    %cst_107 = arith.constant -1.000000e+30 : f32
    %218 = vector.shape_cast %6 : vector<1x256xi1> to vector<1x256xi1>
    %219 = vector.broadcast %218 : vector<1x256xi1> to vector<16x256xi1>
    %220 = vector.broadcast %cst_107 : f32 to vector<16x256xf32>
    %221 = arith.select %219, %217, %220 : vector<16x256xi1>, vector<16x256xf32>
    %222 = arith.maximumf %214, %221 : vector<16x256xf32>
    %cst_108 = arith.constant -1.000000e+30 : f32
    %223 = vector.broadcast %cst_108 : f32 to vector<16x1xf32>
    %224 = vector.extract_strided_slice %203 {offsets = [0, 0], sizes = [16, 255], strides = [1, 1]} : vector<16x256xf32> to vector<16x255xf32>
    %225 = tpu.concatenate %223, %224 in 1 : vector<16x1xf32>, vector<16x255xf32> -> vector<16x256xf32>
    %cst_109 = arith.constant -1.000000e+30 : f32
    %226 = vector.shape_cast %4 : vector<1x256xi1> to vector<1x256xi1>
    %227 = vector.broadcast %226 : vector<1x256xi1> to vector<16x256xi1>
    %228 = vector.broadcast %cst_109 : f32 to vector<16x256xf32>
    %229 = arith.select %227, %225, %228 : vector<16x256xi1>, vector<16x256xf32>
    %230 = arith.maximumf %222, %229 : vector<16x256xf32>
    %231 = arith.maximumf %230, %203 : vector<16x256xf32>
    %232 = vector.extract_strided_slice %203 {offsets = [0, 1], sizes = [16, 255], strides = [1, 1]} : vector<16x256xf32> to vector<16x255xf32>
    %cst_110 = arith.constant -1.000000e+30 : f32
    %233 = vector.broadcast %cst_110 : f32 to vector<16x1xf32>
    %234 = tpu.concatenate %232, %233 in 1 : vector<16x255xf32>, vector<16x1xf32> -> vector<16x256xf32>
    %cst_111 = arith.constant -1.000000e+30 : f32
    %235 = vector.shape_cast %6 : vector<1x256xi1> to vector<1x256xi1>
    %236 = vector.broadcast %235 : vector<1x256xi1> to vector<16x256xi1>
    %237 = vector.broadcast %cst_111 : f32 to vector<16x256xf32>
    %238 = arith.select %236, %234, %237 : vector<16x256xi1>, vector<16x256xf32>
    %239 = arith.maximumf %231, %238 : vector<16x256xf32>
    %240 = vector.extract_strided_slice %203 {offsets = [0, 15], sizes = [16, 241], strides = [1, 1]} : vector<16x256xf32> to vector<16x241xf32>
    %cst_112 = arith.constant -1.000000e+30 : f32
    %241 = vector.broadcast %cst_112 : f32 to vector<16x15xf32>
    %242 = tpu.concatenate %240, %241 in 1 : vector<16x241xf32>, vector<16x15xf32> -> vector<16x256xf32>
    %cst_113 = arith.constant -1.000000e+30 : f32
    %243 = vector.shape_cast %4 : vector<1x256xi1> to vector<1x256xi1>
    %244 = vector.broadcast %243 : vector<1x256xi1> to vector<16x256xi1>
    %245 = vector.broadcast %cst_113 : f32 to vector<16x256xf32>
    %246 = arith.select %244, %242, %245 : vector<16x256xi1>, vector<16x256xf32>
    %247 = arith.maximumf %239, %246 : vector<16x256xf32>
    %248 = vector.extract_strided_slice %203 {offsets = [0, 16], sizes = [16, 240], strides = [1, 1]} : vector<16x256xf32> to vector<16x240xf32>
    %cst_114 = arith.constant -1.000000e+30 : f32
    %249 = vector.broadcast %cst_114 : f32 to vector<16x16xf32>
    %250 = tpu.concatenate %248, %249 in 1 : vector<16x240xf32>, vector<16x16xf32> -> vector<16x256xf32>
    %251 = arith.maximumf %247, %250 : vector<16x256xf32>
    %252 = vector.extract_strided_slice %203 {offsets = [0, 17], sizes = [16, 239], strides = [1, 1]} : vector<16x256xf32> to vector<16x239xf32>
    %cst_115 = arith.constant -1.000000e+30 : f32
    %253 = vector.broadcast %cst_115 : f32 to vector<16x17xf32>
    %254 = tpu.concatenate %252, %253 in 1 : vector<16x239xf32>, vector<16x17xf32> -> vector<16x256xf32>
    %cst_116 = arith.constant -1.000000e+30 : f32
    %255 = vector.shape_cast %6 : vector<1x256xi1> to vector<1x256xi1>
    %256 = vector.broadcast %255 : vector<1x256xi1> to vector<16x256xi1>
    %257 = vector.broadcast %cst_116 : f32 to vector<16x256xf32>
    %258 = arith.select %256, %254, %257 : vector<16x256xi1>, vector<16x256xf32>
    %259 = arith.maximumf %251, %258 : vector<16x256xf32>
    %c0_117 = arith.constant 0 : index
    %c0_118 = arith.constant 0 : index
    %260 = vector.load %arg8[%c0_117, %c0_118] : memref<256x64xf32, #tpu.memory_space<vmem>>, vector<256x64xf32>
    %cst_119 = arith.constant dense<0.000000e+00> : vector<16x64xf32>
    %261 = tpu.matmul %259, %260, %cst_119 {dimension_numbers = #tpu.dot_dimension_numbers<[1], [0], [0], [1], [0, 0, 1, 1], [], []>} : vector<16x256xf32>, vector<256x64xf32>, vector<16x64xf32> -> vector<16x64xf32>
    %c0_120 = arith.constant 0 : index
    %c0_121 = arith.constant 0 : index
    %c0_122 = arith.constant 0 : index
    %262 = vector.load %arg9[%c0_120, %c0_121, %c0_122] : memref<1x16x64xf32, #tpu.memory_space<vmem>>, vector<1x16x64xf32>
    %263 = vector.shape_cast %262 : vector<1x16x64xf32> to vector<16x64xf32>
    %264 = vector.shape_cast %261 : vector<16x64xf32> to vector<1x16x64xf32>
    tpu.vector_store %arg9[%c0_120, %c0_121, %c0_122], %264 {strides = array<i32>} : memref<1x16x64xf32, #tpu.memory_space<vmem>>, vector<1x16x64xf32>,
    return
  }
  func.func @transform_0(%arg0: i32) -> (i32, i32, i32) {
    %c0_i32 = arith.constant 0 : i32
    %c0_i32_0 = arith.constant 0 : i32
    %c0_i32_1 = arith.constant 0 : i32
    return %arg0, %c0_i32, %c0_i32_0 : i32, i32, i32
  }
  func.func @transform_1(%arg0: i32) -> (i32, i32) {
    %c0_i32 = arith.constant 0 : i32
    %c0_i32_0 = arith.constant 0 : i32
    %c0_i32_1 = arith.constant 0 : i32
    return %c0_i32, %c0_i32_0 : i32, i32
  }
  func.func @transform_2(%arg0: i32) -> (i32, i32) {
    %c0_i32 = arith.constant 0 : i32
    %c0_i32_0 = arith.constant 0 : i32
    %c0_i32_1 = arith.constant 0 : i32
    return %c0_i32, %c0_i32_0 : i32, i32
  }
  func.func @transform_3(%arg0: i32) -> (i32, i32) {
    %c0_i32 = arith.constant 0 : i32
    %c0_i32_0 = arith.constant 0 : i32
    %c0_i32_1 = arith.constant 0 : i32
    return %c0_i32, %c0_i32_0 : i32, i32
  }
  func.func @transform_4(%arg0: i32) -> (i32, i32) {
    %c0_i32 = arith.constant 0 : i32
    %c0_i32_0 = arith.constant 0 : i32
    %c0_i32_1 = arith.constant 0 : i32
    return %c0_i32, %c0_i32_0 : i32, i32
  }
  func.func @transform_5(%arg0: i32) -> (i32, i32) {
    %c0_i32 = arith.constant 0 : i32
    %c0_i32_0 = arith.constant 0 : i32
    %c0_i32_1 = arith.constant 0 : i32
    return %c0_i32, %c0_i32_0 : i32, i32
  }
  func.func @transform_6(%arg0: i32) -> (i32, i32) {
    %c0_i32 = arith.constant 0 : i32
    %c0_i32_0 = arith.constant 0 : i32
    %c0_i32_1 = arith.constant 0 : i32
    return %c0_i32, %c0_i32_0 : i32, i32
  }
  func.func @transform_7(%arg0: i32) -> (i32, i32) {
    %c0_i32 = arith.constant 0 : i32
    %c0_i32_0 = arith.constant 0 : i32
    %c0_i32_1 = arith.constant 0 : i32
    return %c0_i32, %c0_i32_0 : i32, i32
  }
  func.func @transform_8(%arg0: i32) -> (i32, i32, i32) {
    %c0_i32 = arith.constant 0 : i32
    %c0_i32_0 = arith.constant 0 : i32
    %c0_i32_1 = arith.constant 0 : i32
    return %arg0, %c0_i32, %c0_i32_0 : i32, i32, i32
  }
}

</mosaic_0001>

<bundles_post_ra>
// kernel: convolution_creation_layer.1
= control target key start
LH: loop header
LB: loop body
LE: loop exit
PB: predicated region body
PF: predicated region fallthrough
CT: control target
= control target key end

     0   :  { %s1733_s27 = smov 0   ;;  %s2320_s0 = inlined_call_operand.vmem [shape: f32[2,3,256], index: 0, kind: input, shape index: {}]   ;;  %s2321_s1 = inlined_call_operand.vmem [shape: f32[8,27], index: 1, kind: input, shape index: {}]   ;;  %s2322_s2 = inlined_call_operand.vmem [shape: f32[8,1], index: 2, kind: input, shape index: {}]   ;;  %s2323_s3 = inlined_call_operand.vmem [shape: f32[16,72], index: 3, kind: input, shape index: {}]   ;;  %s2324_s4 = inlined_call_operand.vmem [shape: f32[16,1], index: 4, kind: input, shape index: {}]   ;;  %s2325_s5 = inlined_call_operand.vmem [shape: f32[16,144], index: 5, kind: input, shape index: {}]   ;;  %s2326_s6 = inlined_call_operand.vmem [shape: f32[16,1], index: 6, kind: input, shape index: {}]   ;;  %s2327_s7 = inlined_call_operand.vmem [shape: f32[256,64], index: 7, kind: input, shape index: {}]   ;;  %s2328_s8 = inlined_call_operand.vmem [shape: f32[2,16,64], index: 8, kind: output, shape index: {}]  }
   0x1 LB: > { %s1465_s28 = sadd.s32 4294967295, %s1676_s27   ;;  %p1469_p0 = scmp.ge.s32.totalorder %s1676_s27, 1  ;;  %s1676_s27 = sphi %s1733_s27, %s18_s27  }
   0x2   : > { %p262_p1 = scmp.lt.s32.totalorder %s1676_s27, 3 }
   0x4   : > { %p263_p2 = pnand %p1469_p0, %p262_p1 }
   0x5   : > { %p296_p3 = scmp.lt.s32.totalorder (!%p263_p2), %s1465_s28, 1  ;;  %s1678_s11 = smov (!%p263_p2), 113  }
   0x6   : > { %266 = sbr.rel (%p263_p2) target bundleno = 1444 (0x5a4), region = 52  ;;  %s1679_s12 = smov (!%p263_p2), 127  }
   0x7   : > { %s1680_s13 = smov (!%p263_p2), 111   ;;  %s1681_s14 = smov (!%p263_p2), 112  }
   0x8   : > { %s1682_s15 = smov (!%p263_p2), 15   ;;  %s1683_s16 = smov (!%p263_p2), 1  }
   0x9   : > { %s1684_s17 = smov (!%p263_p2), 16   ;;  %s1686_s18 = smov (!%p263_p2), 17  }
   0xb   : > { %s2340_s28 = smov (!%p296_p3, %s1465_s28), 1  ;;  %v1685_v3 = vmov 0.0   ;;  %v1687_v4 = vmov 0   ;;  %v475_v5 = vld [vmem:[%s2322_s2] sm:$0xff]  ;;  %v306_v6 = vlaneseq  ;;  %vm457_vm0 = vcmask 908288  }
   0xc   : > { %s1483_s29 = sshll.u32 %s2340_s28, 3  ;;  %556 = vmatprep.mubr.f32.mxu0 %v1685_v3  ;;  %764 = vmatprep.mubr.f32.mxu1 %v1685_v3  ;;  %vm402_vm1 = vcmask 1039360   ;;  %vm442_vm4 = vcmask 916480   ;;  %vm423_vm5 = vcmask 924672   ;;  %vm354_vm8 = vcmask 121856  }
   0xd   : > { %s300_s10 = scalar_lea.vmem %s2320_s0, %s1483_s29  ;;  %1541 = vset.pattern.permute.xlu0 %v1687_v4  ;;  %1542 = vset.pattern.permute.xlu1 %v1687_v4  ;;  %v307_v7 = vand.u32 127, %v306_v6  ;;  %vm485_vm9 = vcmask 1042432   ;;  %vm379_vm10 = vcmask 7168   ;;  %vm339_vm11 = vcmask 130048  }
   0xe   : > { %v315_v0 = vld [vmem:[%s300_s10] sm:$0x77]  ;;  %vm322_vm12 = vcmask 138240   ;;  %vm481_vm13 = vcmask 220160   ;;  %vm1885_vm14 = vmneg %vm339_vm11  ;;  %vm693_vm15 = vcmask 588800  }
   0xf   : > { %419 = vrot.lane.b32.xlu0 %v315_v0, %s1678_s11  ;;  %397 = vst [vmem:[#allocation2 + $0x48] sm:$0x70] %v315_v0  ;;  %398 = vrot.lane.b32.xlu1 %v315_v0, %s1679_s12  ;;  %v317_v1 = vcombine.high %v315_v0, %v315_v0  ;;  %v394_v2 = vcombine.low %v315_v0, %v315_v0  ;;  %v308_v8 = vadd.s32 128, %v307_v7  ;;  %v309_v10 = vand.u32 15, %v307_v7 }
  0x11   : > { %396 = vst [vmem:[#allocation2 + $0x10] sm:$0x70] %v394_v2  ;;  %v310_v9 = vand.u32 15, %v308_v8  ;;  %vm1772_vm3 = vcmp.ne.s32.totalorder %v309_v10, 15  ;;  %vm1785_vm6 = vcmp.ne.s32.totalorder %v309_v10, 0 }
  0x13   : > { %455 = vrot.lane.b32.xlu1 %v317_v1, %s1680_s13  ;;  %400 = vrot.lane.b32.xlu0 %v317_v1, %s1679_s12  ;;  %vm1768_vm2 = vcmp.ne.s32.totalorder %v310_v9, 15  ;;  %vm1789_vm7 = vcmp.ne.s32.totalorder %v310_v9, 0 }
  0x17   : > { %440 = vrot.lane.b32.xlu1 %v317_v1, %s1681_s14  ;;  %421 = vrot.lane.b32.xlu0 %v317_v1, %s1678_s11 }
  0x1b   : > { %350 = vrot.lane.b32.xlu1 %v315_v0, %s1682_s15  ;;  %453 = vrot.lane.b32.xlu0 %v315_v0, %s1680_s13 }
  0x1f   : > { %375 = vrot.lane.b32.xlu1 %v315_v0, %s1683_s16  ;;  %352 = vrot.lane.b32.xlu0 %v317_v1, %s1682_s15 }
  0x23   : > { %438 = vrot.lane.b32.xlu1 %v315_v0, %s1681_s14  ;;  %377 = vrot.lane.b32.xlu0 %v317_v1, %s1683_s16 }
  0x27   : > { %337 = vrot.lane.b32.xlu1 %v317_v1, %s1684_s17  ;;  %335 = vrot.lane.b32.xlu0 %v315_v0, %s1684_s17 }
  0x2b   : > { %320 = vrot.lane.b32.xlu1 %v317_v1, %s1686_s18  ;;  %318 = vrot.lane.b32.xlu0 %v315_v0, %s1686_s18 }
  0x2f   : > { %478 = vperm.xlu0 %1541, %v475_v5  }
  0x81   : > { %v420_v11 = vpop.permute.xlu0 %419  ;;  %v399_v12 = vpop.permute.xlu1 %398 }
  0x85   : > { %v456_v15 = vpop.permute.xlu1 %455  ;;  %v401_v16 = vpop.permute.xlu0 %400 }
  0x86   : > { %v461_v17 = vsel %vm457_vm0, %v456_v15, 0.0  ;;  %v403_v18 = vsel %vm402_vm1, %v399_v12, %v401_v16  ;;  %v406_v19 = vsel %vm402_vm1, %v401_v16, 0.0 }
  0x87   : > { %v463_v20 = vsel %vm1768_vm2, %v461_v17, 0.0  ;;  %v407_v21 = vsel %vm1772_vm3, %v403_v18, 0.0  ;;  %v408_v22 = vsel %vm1768_vm2, %v406_v19, 0.0  ;;  %v466_v18 = vld [vmem:[%s2321_s1] sm:$0xff] }
  0x88   : > { %465 = vst [vmem:[#allocation2 + $0x18] sm:$0x7] %v463_v20  ;;  %v411_v23 = vrot.slane %v407_v21, 1  ;;  %v412_v24 = vrot.slane %v408_v22, 1 }
  0x89   : > { %v441_v27 = vpop.permute.xlu1 %440  ;;  %v422_v28 = vpop.permute.xlu0 %421 }
  0x8a   : > { %415 = vst [vmem:[#allocation2 + $0x108] ss:$-244 sps:$4 sm:$0x83] %v411_v23   ;;  %416 = vst [vmem:[#allocation2 + $0x68] ss:$-28 sps:$4 sm:$0x83] %v412_v24   ;;  %v424_v30 = vsel %vm423_vm5, %v420_v11, %v422_v28 }
  0x8b   : > { %v445_v29 = vsel %vm442_vm4, %v441_v27, 0.0  ;;  %v427_v31 = vsel %vm423_vm5, %v422_v28, 0.0  ;;  %v428_v33 = vsel %vm1785_vm6, %v424_v30, 0.0  ;;  %v682_v28 = vld [vmem:[%s2324_s4 + $0x8] sm:$0xff] }
  0x8c   : > { %v448_v32 = vrot.slane %v445_v29, 3  ;;  %v429_v34 = vsel %vm1789_vm7, %v427_v31, 0.0  ;;  %v432_v35 = vrot.slane %v428_v33, 6  ;;  %v681_v29 = vld [vmem:[%s2324_s4] sm:$0xff] }
  0x8d   : > { %v433_v36 = vrot.slane %v429_v34, 6  ;;  %v351_v37 = vpop.permute.xlu1 %350  ;;  %v454_v38 = vpop.permute.xlu0 %453 }
  0x8e   : > { %452 = vst [vmem:[#allocation2 + $0x68] sm:$0xe0] %v448_v32  ;;  %436 = vst [vmem:[#allocation2 + $0x108] sm:$0x1c] %v432_v35  ;;  %v358_v39 = vsel %vm354_vm8, 0.0, %v351_v37  ;;  %v458_v40 = vsel %vm457_vm0, %v454_v38, %v456_v15 }
  0x8f   : > { %437 = vst [vmem:[#allocation2 + $0x68] sm:$0x1c] %v433_v36  ;;  %v363_v41 = vsel %vm1772_vm3, %v358_v39, 0.0  ;;  %v462_v42 = vsel %vm1772_vm3, %v458_v40, 0.0  ;;  %v474_v43 = vld [vmem:[#allocation2 + $0x18] sm:$0x7] }
  0x90   : > { %v367_v44 = vrot.slane %v363_v41, 2  ;;  %464 = vst [vmem:[#allocation2 + $0x30] sm:$0x7] %v462_v42  ;;  %1474 = vmatprep.subr.msk.mxu0 %vm485_vm9, %v474_v43 }
  0x91   : > { %v376_v45 = vpop.permute.xlu1 %375  ;;  %v353_v46 = vpop.permute.xlu0 %352 }
  0x92   : > { %371 = vst [vmem:[#allocation2 + $0x10] ss:$164 sps:$4 sm:$0xc1] %v367_v44   ;;  %v383_v47 = vsel %vm379_vm10, 0.0, %v376_v45  ;;  %v355_v48 = vsel %vm354_vm8, %v351_v37, %v353_v46 }
  0x93   : > { %v384_v49 = vsel %vm1785_vm6, %v383_v47, 0.0  ;;  %v364_v50 = vsel %vm1768_vm2, %v355_v48, 0.0 }
  0x94   : > { %v388_v51 = vrot.slane %v384_v49, 7  ;;  %v368_v52 = vrot.slane %v364_v50, 2 }
  0x95   : > { %v439_v53 = vpop.permute.xlu1 %438  ;;  %v378_v54 = vpop.permute.xlu0 %377 }
  0x96   : > { %392 = vst [vmem:[#allocation2 + $0x10] sm:$0xe] %v388_v51  ;;  %372 = vst [vmem:[#allocation2 + $0x48] ss:$140 sps:$4 sm:$0xc1] %v368_v52   ;;  %v443_v55 = vsel %vm442_vm4, %v439_v53, %v441_v27  ;;  %v380_v56 = vsel %vm379_vm10, %v376_v45, %v378_v54  ;;  %v472_v61 = vld [vmem:[#allocation2 + $0x68] sm:$0xff] }
  0x97   : > { %v447_v57 = vrot.slane %v443_v55, 3  ;;  %v385_v58 = vsel %vm1789_vm7, %v380_v56, 0.0  ;;  %v473_v59 = vld [vmem:[#allocation2 + $0x30] sm:$0x7] }
  0x98   : > { %v389_v60 = vrot.slane %v385_v58, 7  ;;  %1475 = vmatpush1.msk.msra.mxu0 %vm485_vm9, %v473_v59 }
  0x99   : > { %451 = vst [vmem:[#allocation2 + $0x108] sm:$0xe0] %v447_v57  ;;  %v338_v62 = vpop.permute.xlu1 %337  ;;  %518 = vmatprep.subr.mxu0 %v472_v61  ;;  %v336_v63 = vpop.permute.xlu0 %335  ;;  %v661_v61 = vld [vmem:[%s2323_s3] sm:$0xff] }
  0x9a   : > { %393 = vst [vmem:[#allocation2 + $0x48] sm:$0xe] %v389_v60  ;;  %v340_v0 = vsel %vm339_vm11, %v336_v63, %v338_v62  ;;  %v342_v1 = vsel %vm339_vm11, 0.0, %v336_v63  ;;  %v662_v62 = vld [vmem:[%s2323_s3 + $0x8] sm:$0xff] }
  0x9b   : > { %v344_v2 = vrot.slane %v342_v1, 5  ;;  %v345_v4 = vrot.slane %v340_v0, 5 }
  0x9d   : > { %348 = vst [vmem:[#allocation2 + $0xb0] sm:$0x38] %v344_v2  ;;  %349 = vst [vmem:[#allocation2 + $0xd0] sm:$0x38] %v345_v4  ;;  %v321_v5 = vpop.permute.xlu1 %320  ;;  %v319_v6 = vpop.permute.xlu0 %318  ;;  %v469_v15 = vld [vmem:[#allocation2 + $0x10] sm:$0xff] }
  0x9e   : > { %v323_v7 = vsel %vm322_vm12, %v319_v6, %v321_v5  ;;  %v326_v8 = vsel %vm322_vm12, 0.0, %v319_v6 }
  0x9f   : > { %v331_v9 = vsel %vm1785_vm6, %v326_v8, 0.0  ;;  %v332_v10 = vsel %vm1789_vm7, %v323_v7, 0.0 }
  0xa0   : > { %333 = vst [vmem:[#allocation2 + $0xb0] sm:$0x7] %v331_v9  ;;  %334 = vst [vmem:[#allocation2 + $0xd0] sm:$0x7] %v332_v10  ;;  %v471_v11 = vld [vmem:[#allocation2 + $0x108] sm:$0xff] }
  0xa1   : > { %519 = vmatpush1.msra.mxu0 %v471_v11  ;;  %v470_v12 = vld [vmem:[#allocation2 + $0x48] sm:$0xff] }
  0xa2   : > { %520 = vmatprep.subr.mxu0 %v470_v12 }
  0xa3   : > { %521 = vmatpush1.msra.mxu0 %v469_v15  ;;  %v974_v15 = vld [vmem:[%s2325_s5 + $0x8] sm:$0xff] }
  0xa7   : > { %v468_v16 = vld [vmem:[#allocation2 + $0xd0] sm:$0xff] }
  0xa8   : > { %v467_v17 = vld [vmem:[#allocation2 + $0xb0] sm:$0xff]  ;;  %522 = vmatprep.subr.mxu0 %v468_v16  ;;  %v1014_v16 = vld [vmem:[%s2326_s6 + $0x8] sm:$0xff] }
  0xa9   : > { %523 = vmatpush1.msra.mxu0 %v467_v17  ;;  %v1013_v17 = vld [vmem:[%s2326_s6] sm:$0xff] }
  0xaa   : > { %1476 = vmatmul.mubr.msk.f32.vlgmr.msra.gmra.mxu0 %vm481_vm13, %v466_v18  ;;  %v479_v19 = vpop.permute.xlu0 %478 }
  0xab   : > { %1479 = vmatprep.mubr.msk.f32.mxu0 %vm339_vm11, %v974_v15 }
 0x16a   : > { %v558_v20 = vpop.f32.mrf.mxu0 }
 0x16b   : > { %v559_v21 = vadd.f32 %v558_v20, %v479_v19 }
 0x16c   : > { %v560_v23 = vpop.f32.mrf.mxu0 }
 0x16d   : > { %v563_v22 = vmax.f32 %v559_v21, 0.0  ;;  %v561_v24 = vadd.f32 %v560_v23, %v479_v19 }
 0x16f   : > { %639 = vrot.lane.b32.xlu0 %v563_v22, %s1681_s14  ;;  %649 = vrot.lane.b32.xlu1 %v563_v22, %s1680_s13  ;;  %v564_v27 = vmax.f32 %v561_v24, 0.0 }
 0x173   : > { %601 = vrot.lane.b32.xlu0 %v563_v22, %s1683_s16  ;;  %627 = vrot.lane.b32.xlu1 %v563_v22, %s1678_s11 }
 0x177   : > { %641 = vrot.lane.b32.xlu0 %v564_v27, %s1681_s14  ;;  %615 = vrot.lane.b32.xlu1 %v563_v22, %s1679_s12 }
 0x17b   : > { %617 = vrot.lane.b32.xlu0 %v564_v27, %s1679_s12  ;;  %651 = vrot.lane.b32.xlu1 %v564_v27, %s1680_s13 }
 0x17f   : > { %589 = vrot.lane.b32.xlu0 %v563_v22, %s1682_s15  ;;  %629 = vrot.lane.b32.xlu1 %v564_v27, %s1678_s11 }
 0x183   : > { %579 = vrot.lane.b32.xlu0 %v563_v22, %s1684_s17  ;;  %603 = vrot.lane.b32.xlu1 %v564_v27, %s1683_s16 }
 0x187   : > { %567 = vrot.lane.b32.xlu0 %v563_v22, %s1686_s18  ;;  %591 = vrot.lane.b32.xlu1 %v564_v27, %s1682_s15 }
 0x18b   : > { %690 = vperm.xlu0 %1541, %v682_v28   ;;  %581 = vrot.lane.b32.xlu1 %v564_v27, %s1684_s17 }
 0x18f   : > { %569 = vrot.lane.b32.xlu1 %v564_v27, %s1686_s18 }
 0x193   : > { %685 = vperm.xlu1 %1542, %v681_v29  }
 0x1e1   : > { %v640_v30 = vpop.permute.xlu0 %639  ;;  %v650_v31 = vpop.permute.xlu1 %649 }
 0x1e5   : > { %v602_v32 = vpop.permute.xlu0 %601  ;;  %v628_v33 = vpop.permute.xlu1 %627 }
 0x1e6   : > { %v608_v49 = vsel %vm379_vm10, 0.0, %v602_v32 }
 0x1e9   : > { %v642_v34 = vpop.permute.xlu0 %641  ;;  %v616_v35 = vpop.permute.xlu1 %615 }
 0x1ea   : > { %v643_v41 = vsel %vm442_vm4, %v640_v30, %v642_v34 }
 0x1ed   : > { %v618_v36 = vpop.permute.xlu0 %617  ;;  %v652_v37 = vpop.permute.xlu1 %651 }
 0x1ee   : > { %v653_v38 = vsel %vm457_vm0, %v650_v31, %v652_v37  ;;  %v656_v39 = vsel %vm457_vm0, %v652_v37, 0.0  ;;  %v622_v42 = vsel %vm402_vm1, %v618_v36, 0.0  ;;  %v619_v46 = vsel %vm402_vm1, %v616_v35, %v618_v36 }
 0x1ef   : > { %1625 = vmatprep.subr.msk.mxu1 %vm1768_vm2, %v656_v39 }
 0x1f0   : > { %1626 = vmatpush1.msk.msra.mxu1 %vm1772_vm3, %v653_v38 }
 0x1f1   : > { %v630_v40 = vpop.permute.xlu1 %629  ;;  %v590_v43 = vpop.permute.xlu0 %589  ;;  %1627 = vmatprep.subr.msk.mxu1 %vm442_vm4, %v642_v34 }
 0x1f2   : > { %v631_v44 = vsel %vm423_vm5, %v628_v33, %v630_v40  ;;  %v634_v45 = vsel %vm423_vm5, %v630_v40, 0.0  ;;  %717 = vmatpush1.msra.mxu1 %v643_v41  ;;  %v596_v51 = vsel %vm354_vm8, 0.0, %v590_v43 }
 0x1f3   : > { %1628 = vmatprep.subr.msk.mxu1 %vm1789_vm7, %v634_v45 }
 0x1f4   : > { %1629 = vmatpush1.msk.msra.mxu1 %vm1785_vm6, %v631_v44 }
 0x1f5   : > { %v604_v47 = vpop.permute.xlu1 %603  ;;  %1630 = vmatprep.subr.msk.mxu1 %vm1768_vm2, %v622_v42  ;;  %v580_v50 = vpop.permute.xlu0 %579 }
 0x1f6   : > { %v605_v48 = vsel %vm379_vm10, %v602_v32, %v604_v47  ;;  %1631 = vmatpush1.msk.msra.mxu1 %vm1772_vm3, %v619_v46 }
 0x1f7   : > { %722 = vmatprep.subr.mxu1 %v564_v27 }
 0x1f8   : > { %723 = vmatpush1.msra.mxu1 %v563_v22 }
 0x1f9   : > { %v592_v52 = vpop.permute.xlu1 %591  ;;  %1632 = vmatprep.subr.msk.mxu1 %vm1789_vm7, %v605_v48  ;;  %v568_v55 = vpop.permute.xlu0 %567 }
 0x1fa   : > { %v593_v53 = vsel %vm354_vm8, %v590_v43, %v592_v52  ;;  %1633 = vmatpush1.msk.msra.mxu1 %vm1785_vm6, %v608_v49  ;;  %v574_v58 = vsel %vm322_vm12, 0.0, %v568_v55 }
 0x1fb   : > { %1634 = vmatprep.subr.msk.mxu1 %vm1768_vm2, %v593_v53 }
 0x1fc   : > { %1635 = vmatpush1.msk.msra.mxu1 %vm1772_vm3, %v596_v51 }
 0x1fd   : > { %v582_v54 = vpop.permute.xlu1 %581 }
 0x1fe   : > { %v583_v56 = vsel %vm339_vm11, %v580_v50, %v582_v54 }
 0x1ff   : > { %728 = vmatprep.subr.mxu1 %v583_v56 }
 0x200   : > { %1637 = vmatpush1.msk.msra.mxu1 %vm1885_vm14, %v580_v50 }
 0x201   : > { %v570_v59 = vpop.permute.xlu1 %569 }
 0x202   : > { %v571_v60 = vsel %vm322_vm12, %v568_v55, %v570_v59 }
 0x203   : > { %1638 = vmatprep.subr.msk.mxu1 %vm1789_vm7, %v571_v60 }
 0x204   : > { %1639 = vmatpush1.msk.msra.mxu1 %vm1785_vm6, %v574_v58 }
 0x205   : > { %1477 = vmatmul.mubr.msk.f32.vlgmr.msra.gmra.mxu1 %vm693_vm15, %v661_v61 }
 0x206   : > { %770 = vmatprep.mubr.f32.mxu1 %v1685_v3  ;;  %v691_v6 = vpop.permute.xlu0 %690 }
 0x209   : > { %1478 = vmatmul.mubr.msk.f32.gmra.mxu1 %vm693_vm15, %v662_v62 }
 0x20e   : > { %v686_v63 = vpop.permute.xlu1 %685 }
 0x2c5   : > { %v766_v0 = vpop.f32.mrf.mxu1 }
 0x2c6   : > { %v767_v1 = vadd.f32 %v766_v0, %v686_v63 }
 0x2c7   : > { %v768_v2 = vpop.f32.mrf.mxu1 }
 0x2c8   : > { %v1904_v4 = vmax.f32 %v767_v1, 0.0  ;;  %v769_v5 = vadd.f32 %v768_v2, %v686_v63 }
 0x2c9   : > { %v772_v7 = vpop.f32.mrf.mxu1 }
 0x2ca   : > { %v1906_v8 = vmax.f32 %v769_v5, 0.0  ;;  %v773_v9 = vadd.f32 %v772_v7, %v691_v6  ;;  %905 = vrot.lane.b32.xlu1 %v1904_v4, %s1678_s11  ;;  %929 = vrot.lane.b32.xlu0 %v1904_v4, %s1681_s14 }
 0x2cb   : > { %v774_v3 = vpop.f32.mrf.mxu1 }
 0x2cc   : > { %v1912_v10 = vmax.f32 %v773_v9, 0.0  ;;  %v775_v11 = vadd.f32 %v774_v3, %v691_v6 }
 0x2ce   : > { %v1914_v12 = vmax.f32 %v775_v11, 0.0  ;;  %881 = vrot.lane.b32.xlu1 %v1904_v4, %s1679_s12  ;;  %853 = vrot.lane.b32.xlu0 %v1904_v4, %s1683_s16 }
 0x2d2   : > { %855 = vrot.lane.b32.xlu1 %v1906_v8, %s1683_s16  ;;  %931 = vrot.lane.b32.xlu0 %v1906_v8, %s1681_s14 }
 0x2d6   : > { %933 = vrot.lane.b32.xlu1 %v1912_v10, %s1681_s14  ;;  %907 = vrot.lane.b32.xlu0 %v1906_v8, %s1678_s11 }
 0x2da   : > { %909 = vrot.lane.b32.xlu1 %v1912_v10, %s1678_s11  ;;  %883 = vrot.lane.b32.xlu0 %v1906_v8, %s1679_s12 }
 0x2de   : > { %885 = vrot.lane.b32.xlu1 %v1912_v10, %s1679_s12  ;;  %857 = vrot.lane.b32.xlu0 %v1912_v10, %s1683_s16 }
 0x2e2   : > { %911 = vrot.lane.b32.xlu1 %v1914_v12, %s1678_s11  ;;  %935 = vrot.lane.b32.xlu0 %v1914_v12, %s1681_s14 }
 0x2e6   : > { %831 = vrot.lane.b32.xlu1 %v1906_v8, %s1682_s15  ;;  %833 = vrot.lane.b32.xlu0 %v1912_v10, %s1682_s15 }
 0x2ea   : > { %811 = vrot.lane.b32.xlu1 %v1906_v8, %s1684_s17  ;;  %887 = vrot.lane.b32.xlu0 %v1914_v12, %s1679_s12 }
 0x2ee   : > { %787 = vrot.lane.b32.xlu1 %v1906_v8, %s1686_s18  ;;  %829 = vrot.lane.b32.xlu0 %v1904_v4, %s1682_s15 }
 0x2f2   : > { %859 = vrot.lane.b32.xlu1 %v1914_v12, %s1683_s16  ;;  %813 = vrot.lane.b32.xlu0 %v1912_v10, %s1684_s17 }
 0x2f6   : > { %835 = vrot.lane.b32.xlu1 %v1914_v12, %s1682_s15  ;;  %809 = vrot.lane.b32.xlu0 %v1904_v4, %s1684_s17 }
 0x2fa   : > { %815 = vrot.lane.b32.xlu1 %v1914_v12, %s1684_s17  ;;  %789 = vrot.lane.b32.xlu0 %v1912_v10, %s1686_s18 }
 0x2fe   : > { %791 = vrot.lane.b32.xlu1 %v1914_v12, %s1686_s18  ;;  %785 = vrot.lane.b32.xlu0 %v1904_v4, %s1686_s18 }
 0x302   : > { %953 = vrot.lane.b32.xlu1 %v1912_v10, %s1680_s13  ;;  %955 = vrot.lane.b32.xlu0 %v1914_v12, %s1680_s13 }
 0x306   : > { %949 = vrot.lane.b32.xlu1 %v1904_v4, %s1680_s13  ;;  %951 = vrot.lane.b32.xlu0 %v1906_v8, %s1680_s13 }
 0x30a   : > { %1022 = vperm.xlu1 %1542, %v1014_v16   ;;  %1017 = vperm.xlu0 %1541, %v1013_v17  }
 0x33c   : > { %v906_v18 = vpop.permute.xlu1 %905  ;;  %v930_v19 = vpop.permute.xlu0 %929 }
 0x340   : > { %v882_v20 = vpop.permute.xlu1 %881  ;;  %v854_v21 = vpop.permute.xlu0 %853 }
 0x341   : > { %v1987_v22 = vsel %vm379_vm10, 0.0, %v854_v21 }
 0x344   : > { %v856_v23 = vpop.permute.xlu1 %855  ;;  %v932_v24 = vpop.permute.xlu0 %931 }
 0x345   : > { %v861_v27 = vsel %vm379_vm10, %v854_v21, %v856_v23  ;;  %v937_v28 = vsel %vm442_vm4, %v930_v19, %v932_v24 }
 0x348   : > { %v934_v29 = vpop.permute.xlu1 %933  ;;  %v908_v30 = vpop.permute.xlu0 %907 }
 0x349   : > { %v913_v31 = vsel %vm423_vm5, %v906_v18, %v908_v30  ;;  %v919_v32 = vsel %vm423_vm5, %v908_v30, 0.0  ;;  %v1315_v30 = vld [vmem:[%s2327_s7 + $0x78] sm:$0xff] }
 0x34c   : > { %v910_v33 = vpop.permute.xlu1 %909  ;;  %v884_v34 = vpop.permute.xlu0 %883 }
 0x34d   : > { %v889_v35 = vsel %vm402_vm1, %v882_v20, %v884_v34  ;;  %v895_v36 = vsel %vm402_vm1, %v884_v34, 0.0 }
 0x350   : > { %v886_v37 = vpop.permute.xlu1 %885  ;;  %v858_v38 = vpop.permute.xlu0 %857 }
 0x351   : > { %v868_v39 = vsel %vm379_vm10, 0.0, %v858_v38 }
 0x354   : > { %v912_v40 = vpop.permute.xlu1 %911  ;;  %v936_v41 = vpop.permute.xlu0 %935 }
 0x355   : > { %v914_v42 = vsel %vm423_vm5, %v910_v33, %v912_v40  ;;  %v920_v43 = vsel %vm423_vm5, %v912_v40, 0.0  ;;  %v938_v44 = vsel %vm442_vm4, %v934_v29, %v936_v41  ;;  %1640 = vmatprep.subr.msk.mxu0 %vm442_vm4, %v936_v41  ;;  %v1331_v29 = vld [vmem:[%s2327_s7 + $0xf8] sm:$0xff]  ;;  %v1312_v41 = vld [vmem:[%s2327_s7 + $0x60] sm:$0xff] }
 0x356   : > { %1032 = vmatpush1.msra.mxu0 %v938_v44  ;;  %1485 = vmatprep.subr.mxu1 %v1331_v29 }
 0x357   : > { %1641 = vmatprep.subr.msk.mxu0 %vm442_vm4, %v932_v24  ;;  %v973_v24 = vld [vmem:[%s2325_s5] sm:$0xff]  ;;  %1486 = vmatpush3.msra.mxu1 %v1315_v30 }
 0x358   : > { %v832_v45 = vpop.permute.xlu1 %831  ;;  %v834_v46 = vpop.permute.xlu0 %833  ;;  %1034 = vmatpush1.msra.mxu0 %v937_v28  ;;  %v975_v28 = vld [vmem:[%s2325_s5 + $0x10] sm:$0xff] }
 0x359   : > { %v844_v47 = vsel %vm354_vm8, 0.0, %v834_v46  ;;  %1642 = vmatprep.subr.msk.mxu0 %vm1789_vm7, %v920_v43  ;;  %v1327_v43 = vld [vmem:[%s2327_s7 + $0xd8] sm:$0xff] }
 0x35a   : > { %1643 = vmatpush1.msk.msra.mxu0 %vm1785_vm6, %v914_v42 }
 0x35b   : > { %1644 = vmatprep.subr.msk.mxu0 %vm1789_vm7, %v919_v32  ;;  %v1314_v32 = vld [vmem:[%s2327_s7 + $0x70] sm:$0xff] }
 0x35c   : > { %v812_v48 = vpop.permute.xlu1 %811  ;;  %v888_v49 = vpop.permute.xlu0 %887  ;;  %1645 = vmatpush1.msk.msra.mxu0 %vm1785_vm6, %v913_v31  ;;  %v1330_v31 = vld [vmem:[%s2327_s7 + $0xf0] sm:$0xff] }
 0x35d   : > { %v890_v50 = vsel %vm402_vm1, %v886_v37, %v888_v49  ;;  %v896_v51 = vsel %vm402_vm1, %v888_v49, 0.0  ;;  %1487 = vmatprep.subr.mxu1 %v1330_v31  ;;  %v1313_v37 = vld [vmem:[%s2327_s7 + $0x68] sm:$0xff]  ;;  %v1326_v49 = vld [vmem:[%s2327_s7 + $0xd0] sm:$0xff] }
 0x35e   : > { %1646 = vmatprep.subr.msk.mxu0 %vm1768_vm2, %v896_v51  ;;  %1488 = vmatpush3.msra.mxu1 %v1314_v32 }
 0x35f   : > { %1647 = vmatpush1.msk.msra.mxu0 %vm1772_vm3, %v890_v50 }
 0x360   : > { %v788_v52 = vpop.permute.xlu1 %787  ;;  %v830_v53 = vpop.permute.xlu0 %829  ;;  %1648 = vmatprep.subr.msk.mxu0 %vm1768_vm2, %v895_v36 }
 0x361   : > { %v837_v54 = vsel %vm354_vm8, %v830_v53, %v832_v45  ;;  %v843_v55 = vsel %vm354_vm8, 0.0, %v830_v53  ;;  %1649 = vmatpush1.msk.msra.mxu0 %vm1772_vm3, %v889_v35  ;;  %v1329_v35 = vld [vmem:[%s2327_s7 + $0xe8] sm:$0xff] }
 0x362   : > { %1043 = vmatprep.subr.mxu0 %v1914_v12  ;;  %1489 = vmatprep.subr.mxu1 %v1329_v35  ;;  %v1325_v53 = vld [vmem:[%s2327_s7 + $0xc8] sm:$0xff] }
 0x363   : > { %1044 = vmatpush1.msra.mxu0 %v1912_v10  ;;  %1490 = vmatpush3.msra.mxu1 %v1313_v37 }
 0x364   : > { %v860_v56 = vpop.permute.xlu1 %859  ;;  %v814_v58 = vpop.permute.xlu0 %813  ;;  %1045 = vmatprep.subr.mxu0 %v1906_v8 }
 0x365   : > { %v862_v59 = vsel %vm379_vm10, %v858_v38, %v860_v56  ;;  %v824_v60 = vsel %vm339_vm11, 0.0, %v814_v58  ;;  %1046 = vmatpush1.msra.mxu0 %v1904_v4  ;;  %v1324_v56 = vld [vmem:[%s2327_s7 + $0xc0] sm:$0xff] }
 0x366   : > { %827 = vst [vmem:[#allocation2 + $0x30] sm:$0xff] %v824_v60  ;;  %1650 = vmatprep.subr.msk.mxu0 %vm1789_vm7, %v862_v59  ;;  %v1308_v60 = vld [vmem:[%s2327_s7 + $0x40] sm:$0xff] }
 0x367   : > { %1651 = vmatpush1.msk.msra.mxu0 %vm1785_vm6, %v868_v39  ;;  %v1328_v39 = vld [vmem:[%s2327_s7 + $0xe0] sm:$0xff] }
 0x368   : > { %v836_v61 = vpop.permute.xlu1 %835  ;;  %v810_v62 = vpop.permute.xlu0 %809  ;;  %1652 = vmatprep.subr.msk.mxu0 %vm1789_vm7, %v861_v27  ;;  %v976_v27 = vld [vmem:[%s2325_s5 + $0x18] sm:$0xff]  ;;  %1491 = vmatprep.subr.mxu1 %v1328_v39 }
 0x369   : > { %v838_v63 = vsel %vm354_vm8, %v834_v46, %v836_v61  ;;  %v817_v0 = vsel %vm339_vm11, %v810_v62, %v812_v48  ;;  %v823_v1 = vsel %vm339_vm11, 0.0, %v810_v62  ;;  %1653 = vmatpush1.msk.msra.mxu0 %vm1785_vm6, %v1987_v22  ;;  %1492 = vmatpush3.msra.mxu1 %v1312_v41  ;;  %v1311_v46 = vld [vmem:[%s2327_s7 + $0x58] sm:$0xff] }
 0x36a   : > { %825 = vst [vmem:[#allocation2 + $0x108] sm:$0xff] %v823_v1  ;;  %826 = vst [vmem:[#allocation2 + $0x68] sm:$0xff] %v817_v0  ;;  %1654 = vmatprep.subr.msk.mxu0 %vm1768_vm2, %v838_v63  ;;  %1493 = vmatprep.subr.mxu1 %v1327_v43  ;;  %v1323_v61 = vld [vmem:[%s2327_s7 + $0xb8] sm:$0xff]  ;;  %v1322_v1 = vld [vmem:[%s2327_s7 + $0xb0] sm:$0xff] }
 0x36b   : > { %1655 = vmatpush1.msk.msra.mxu0 %vm1772_vm3, %v844_v47  ;;  %1494 = vmatpush3.msra.mxu1 %v1311_v46  ;;  %v1307_v63 = vld [vmem:[%s2327_s7 + $0x38] sm:$0xff] }
 0x36c   : > { %v816_v2 = vpop.permute.xlu1 %815  ;;  %v790_v4 = vpop.permute.xlu0 %789  ;;  %1656 = vmatprep.subr.msk.mxu0 %vm1768_vm2, %v837_v54  ;;  %1495 = vmatprep.subr.mxu1 %v1326_v49 }
 0x36d   : > { %v818_v5 = vsel %vm339_vm11, %v814_v58, %v816_v2  ;;  %v800_v6 = vsel %vm322_vm12, 0.0, %v790_v4  ;;  %1657 = vmatpush1.msk.msra.mxu0 %vm1772_vm3, %v843_v55  ;;  %v1309_v55 = vld [vmem:[%s2327_s7 + $0x48] sm:$0xff]  ;;  %v1306_v2 = vld [vmem:[%s2327_s7 + $0x30] sm:$0xff] }
 0x36e   : > { %828 = vst [vmem:[#allocation2 + $0x18] sm:$0xff] %v818_v5  ;;  %v803_v7 = vsel %vm1785_vm6, %v800_v6, 0.0  ;;  %1055 = vmatprep.subr.mxu0 %v818_v5  ;;  %v1305_v5 = vld [vmem:[%s2327_s7 + $0x28] sm:$0xff] }
 0x36f   : > { %807 = vst [vmem:[#allocation2 + $0x10] sm:$0xff] %v803_v7  ;;  %1659 = vmatpush1.msk.msra.mxu0 %vm1885_vm14, %v814_v58  ;;  %v1304_v7 = vld [vmem:[%s2327_s7 + $0x20] sm:$0xff] }
 0x370   : > { %v792_v8 = vpop.permute.xlu1 %791  ;;  %v786_v9 = vpop.permute.xlu0 %785  ;;  %1057 = vmatprep.subr.mxu0 %v817_v0 }
 0x371   : > { %v794_v3 = vsel %vm322_vm12, %v790_v4, %v792_v8  ;;  %v793_v10 = vsel %vm322_vm12, %v786_v9, %v788_v52  ;;  %v799_v11 = vsel %vm322_vm12, 0.0, %v786_v9  ;;  %1661 = vmatpush1.msk.msra.mxu0 %vm1885_vm14, %v810_v62  ;;  %v1310_v52 = vld [vmem:[%s2327_s7 + $0x50] sm:$0xff]  ;;  %v1321_v4 = vld [vmem:[%s2327_s7 + $0xa8] sm:$0xff]  ;;  %v1319_v8 = vld [vmem:[%s2327_s7 + $0x98] sm:$0xff] }
 0x372   : > { %v804_v12 = vsel %vm1789_vm7, %v794_v3, 0.0  ;;  %v801_v15 = vsel %vm1785_vm6, %v799_v11, 0.0  ;;  %v802_v16 = vsel %vm1789_vm7, %v793_v10, 0.0  ;;  %1662 = vmatprep.subr.msk.mxu0 %vm1789_vm7, %v794_v3  ;;  %1496 = vmatpush3.msra.mxu1 %v1310_v52  ;;  %v1303_v9 = vld [vmem:[%s2327_s7 + $0x18] sm:$0xff]  ;;  %v1318_v3 = vld [vmem:[%s2327_s7 + $0x90] sm:$0xff] }
 0x373   : > { %808 = vst [vmem:[#allocation2 + $0x48] sm:$0xff] %v804_v12  ;;  %805 = vst [vmem:[#allocation2 + $0xb0] sm:$0xff] %v801_v15  ;;  %1663 = vmatpush1.msk.msra.mxu0 %vm1785_vm6, %v800_v6  ;;  %1497 = vmatprep.subr.mxu1 %v1325_v53  ;;  %v1320_v6 = vld [vmem:[%s2327_s7 + $0xa0] sm:$0xff]  ;;  %v1317_v12 = vld [vmem:[%s2327_s7 + $0x88] sm:$0xff] }
 0x374   : > { %806 = vst [vmem:[#allocation2 + $0xd0] sm:$0xff] %v802_v16  ;;  %v954_v17 = vpop.permute.xlu1 %953  ;;  %v956_v18 = vpop.permute.xlu0 %955  ;;  %1664 = vmatprep.subr.msk.mxu0 %vm1789_vm7, %v793_v10  ;;  %1498 = vmatpush3.msra.mxu1 %v1309_v55  ;;  %v1301_v15 = vld [vmem:[%s2327_s7 + $0x8] sm:$0xff]  ;;  %v1316_v16 = vld [vmem:[%s2327_s7 + $0x80] sm:$0xff] }
 0x375   : > { %v958_v19 = vsel %vm457_vm0, %v954_v17, %v956_v18  ;;  %v964_v20 = vsel %vm457_vm0, %v956_v18, 0.0  ;;  %1665 = vmatpush1.msk.msra.mxu0 %vm1785_vm6, %v799_v11  ;;  %1499 = vmatprep.subr.mxu1 %v1324_v56  ;;  %v1302_v11 = vld [vmem:[%s2327_s7 + $0x10] sm:$0xff]  ;;  %v1300_v17 = vld [vmem:[%s2327_s7] sm:$0xff] }
 0x376   : > { %1666 = vmatprep.subr.msk.mxu0 %vm1768_vm2, %v964_v20  ;;  %1500 = vmatpush3.msra.mxu1 %v1308_v60 }
 0x377   : > { %1667 = vmatpush2.msk.msra.mxu0 %vm1772_vm3, %v958_v19  ;;  %1501 = vmatprep.subr.mxu1 %v1323_v61 }
 0x378   : > { %v950_v57 = vpop.permute.xlu1 %949  ;;  %v952_v21 = vpop.permute.xlu0 %951  ;;  %1502 = vmatpush3.msra.mxu1 %v1307_v63 }
 0x379   : > { %v957_v22 = vsel %vm457_vm0, %v950_v57, %v952_v21  ;;  %v963_v23 = vsel %vm457_vm0, %v952_v21, 0.0  ;;  %1503 = vmatprep.subr.mxu1 %v1322_v1 }
 0x37a   : > { %1668 = vmatprep.subr.msk.mxu0 %vm1768_vm2, %v963_v23  ;;  %1504 = vmatpush3.msra.mxu1 %v1306_v2 }
 0x37b   : > { %1669 = vmatpush2.msk.msra.mxu0 %vm1772_vm3, %v957_v22  ;;  %1505 = vmatprep.subr.mxu1 %v1321_v4 }
 0x37c   : > { %1096 = vmatmul.mubr.f32.vlgmr.msra.gmra.mxu0 %v973_v24  ;;  %1506 = vmatpush3.msra.mxu1 %v1305_v5 }
 0x37d   : > { %1480 = vmatprep.mubr.msk.f32.mxu0 %vm339_vm11, %v976_v27  ;;  %1507 = vmatprep.subr.mxu1 %v1320_v6 }
 0x37e   : > { %1508 = vmatpush3.msra.mxu1 %v1304_v7 }
 0x37f   : > { %1509 = vmatprep.subr.mxu1 %v1319_v8 }
 0x380   : > { %1102 = vmatmul.mubr.f32.gmra.mxu0 %v975_v28  ;;  %1510 = vmatpush3.msra.mxu1 %v1303_v9 }
 0x381   : > { %1511 = vmatprep.subr.mxu1 %v1318_v3 }
 0x382   : > { %1512 = vmatpush3.msra.mxu1 %v1302_v11 }
 0x383   : > { %1513 = vmatprep.subr.mxu1 %v1317_v12 }
 0x384   : > { %1514 = vmatpush3.msra.mxu1 %v1301_v15 }
 0x385   : > { %v1018_v33 = vpop.permute.xlu0 %1017  ;;  %v1023_v47 = vpop.permute.xlu1 %1022  ;;  %1515 = vmatprep.subr.mxu1 %v1316_v16 }
 0x386   : > { %1516 = vmatpush3.msra.mxu1 %v1300_v17 }
 0x43c   : > { %v1097_v34 = vpop.f32.mrf.mxu0 }
 0x43d   : > { %v1098_v36 = vadd.f32 %v1097_v34, %v1018_v33 }
 0x43e   : > { %v1099_v38 = vpop.f32.mrf.mxu0 }
 0x43f   : > { %v1100_v40 = vadd.f32 %v1099_v38, %v1018_v33  ;;  %v2122_v44 = vmax.f32 %v1098_v36, 0.0 }
 0x440   : > { %v1103_v42 = vpop.f32.mrf.mxu0 }
 0x441   : > { %v2124_v45 = vmax.f32 %v1100_v40, 0.0  ;;  %v1104_v54 = vadd.f32 %v1103_v42, %v1023_v47 }
 0x442   : > { %v1105_v48 = vpop.f32.mrf.mxu0 }
 0x443   : > { %v1106_v50 = vadd.f32 %v1105_v48, %v1023_v47  ;;  %v1548_v51 = vpack.i.bf16 %v2124_v45, %v2122_v44  ;;  %v1568_v59 = vpack.i.bf16 %v2122_v44, %v2124_v45  ;;  %v2158_v62 = vmax.f32 %v1104_v54, 0.0 }
 0x445   : > { %1549 = vrot.lane.b32.xlu1 %v1548_v51, %s1684_s17  ;;  %1544 = vrot.lane.b32.xlu0 %v1548_v51, %s1686_s18  ;;  %v2148_v58 = vmax.f32 %v1106_v50, 0.0 }
 0x447   : > { %v1573_v0 = vpack.i.bf16 %v2148_v58, %v2158_v62  ;;  %v1603_v10 = vpack.i.bf16 %v2158_v62, %v2148_v58 }
 0x449   : > { %1569 = vrot.lane.b32.xlu1 %v1568_v59, %s1678_s11  ;;  %1554 = vrot.lane.b32.xlu0 %v1548_v51, %s1682_s15 }
 0x44d   : > { %1574 = vrot.lane.b32.xlu1 %v1573_v0, %s1686_s18  ;;  %1559 = vrot.lane.b32.xlu0 %v1548_v51, %s1683_s16 }
 0x451   : > { %1579 = vrot.lane.b32.xlu1 %v1573_v0, %s1684_s17  ;;  %1564 = vrot.lane.b32.xlu0 %v1568_v59, %s1679_s12 }
 0x455   : > { %1589 = vrot.lane.b32.xlu1 %v1573_v0, %s1683_s16  ;;  %1584 = vrot.lane.b32.xlu0 %v1573_v0, %s1682_s15 }
 0x459   : > { %1594 = vrot.lane.b32.xlu1 %v1568_v59, %s1681_s14  ;;  %1604 = vrot.lane.b32.xlu0 %v1603_v10, %s1679_s12 }
 0x45d   : > { %1599 = vrot.lane.b32.xlu1 %v1568_v59, %s1680_s13  ;;  %1609 = vrot.lane.b32.xlu0 %v1603_v10, %s1678_s11  ;;  %s1484_s11 = sshll.u32 %s2340_s28, 4 }
 0x461   : > { %1619 = vrot.lane.b32.xlu1 %v1603_v10, %s1680_s13  ;;  %1614 = vrot.lane.b32.xlu0 %v1603_v10, %s1681_s14  ;;  %s305_s14 = scalar_lea.vmem %s2328_s8, %s1484_s11 }
 0x4b7   : > { %v1550_v18 = vpop.permute.xlu1 %1549  ;;  %v1545_v19 = vpop.permute.xlu0 %1544 }
 0x4b8   : > { %v1552_v20 = vunpack.i.h.bf16 %v1550_v18  ;;  %v1551_v57 = vunpack.i.l.bf16 %v1550_v18  ;;  %v1547_v21 = vunpack.i.h.bf16 %v1545_v19  ;;  %v1546_v22 = vunpack.i.l.bf16 %v1545_v19 }
 0x4ba   : > { %v1124_v23 = vsel %vm322_vm12, %v1546_v22, %v1547_v21  ;;  %v1130_v24 = vsel %vm322_vm12, -1e+30, %v1546_v22  ;;  %v1144_v27 = vsel %vm339_vm11, %v1551_v57, %v1552_v20  ;;  %v1150_v28 = vsel %vm339_vm11, -1e+30, %v1551_v57 }
 0x4bb   : > { %v1132_v29 = vsel %vm1785_vm6, %v1130_v24, -1e+30  ;;  %v1133_v30 = vsel %vm1789_vm7, %v1124_v23, -1e+30  ;;  %v1570_v31 = vpop.permute.xlu1 %1569  ;;  %v1555_v32 = vpop.permute.xlu0 %1554 }
 0x4bc   : > { %v1572_v33 = vunpack.i.h.bf16 %v1570_v31  ;;  %v1571_v34 = vunpack.i.l.bf16 %v1570_v31  ;;  %v1557_v35 = vunpack.i.h.bf16 %v1555_v32  ;;  %v1556_v36 = vunpack.i.l.bf16 %v1555_v32 }
 0x4bd   : > { %v1152_v37 = vmax.f32 %v1132_v29, %v1150_v28  ;;  %v1153_v38 = vmax.f32 %v1133_v30, %v1144_v27 }
 0x4be   : > { %v2232_v39 = vsel %vm423_vm5, %v1572_v33, %v1571_v34  ;;  %v2235_v40 = vsel %vm423_vm5, %v1571_v34, -1e+30  ;;  %v1164_v41 = vsel %vm354_vm8, %v1556_v36, %v1557_v35  ;;  %v1170_v42 = vsel %vm354_vm8, -1e+30, %v1556_v36 }
 0x4bf   : > { %v1575_v43 = vpop.permute.xlu1 %1574  ;;  %v1560_v46 = vpop.permute.xlu0 %1559  ;;  %v1172_v47 = vsel %vm1772_vm3, %v1170_v42, -1e+30  ;;  %v1173_v48 = vsel %vm1768_vm2, %v1164_v41, -1e+30  ;;  %v1248_v53 = vsel %vm1785_vm6, %v2232_v39, -1e+30 }
 0x4c0   : > { %v1577_v49 = vunpack.i.h.bf16 %v1575_v43  ;;  %v1576_v50 = vunpack.i.l.bf16 %v1575_v43  ;;  %v1562_v51 = vunpack.i.h.bf16 %v1560_v46  ;;  %v1561_v52 = vunpack.i.l.bf16 %v1560_v46 }
 0x4c1   : > { %v1249_v54 = vsel %vm1789_vm7, %v2235_v40, -1e+30  ;;  %v1176_v55 = vmax.f32 %v1152_v37, %v1172_v47  ;;  %v1177_v56 = vmax.f32 %v1153_v38, %v1173_v48 }
 0x4c2   : > { %v1125_v59 = vsel %vm322_vm12, %v1576_v50, %v1577_v49  ;;  %v1131_v60 = vsel %vm322_vm12, -1e+30, %v1576_v50  ;;  %v1188_v61 = vsel %vm379_vm10, %v1561_v52, %v1562_v51  ;;  %v1194_v63 = vsel %vm379_vm10, -1e+30, %v1561_v52 }
 0x4c3   : > { %v1580_v0 = vpop.permute.xlu1 %1579  ;;  %v1565_v1 = vpop.permute.xlu0 %1564  ;;  %v1196_v2 = vsel %vm1785_vm6, %v1194_v63, -1e+30  ;;  %v1197_v4 = vsel %vm1789_vm7, %v1188_v61, -1e+30  ;;  %v1134_v10 = vsel %vm1785_vm6, %v1131_v60, -1e+30 }
 0x4c4   : > { %v1582_v5 = vunpack.i.h.bf16 %v1580_v0  ;;  %v1581_v6 = vunpack.i.l.bf16 %v1580_v0  ;;  %v1200_v7 = vmax.f32 %v1176_v55, %v1196_v2  ;;  %v1201_v8 = vmax.f32 %v1177_v56, %v1197_v4 }
 0x4c5   : > { %v1567_v9 = vunpack.i.h.bf16 %v1565_v1  ;;  %v1566_v3 = vunpack.i.l.bf16 %v1565_v1  ;;  %v1135_v11 = vsel %vm1789_vm7, %v1125_v59, -1e+30 }
 0x4c6   : > { %v1145_v12 = vsel %vm339_vm11, %v1581_v6, %v1582_v5  ;;  %v1151_v15 = vsel %vm339_vm11, -1e+30, %v1581_v6  ;;  %v1204_v16 = vmax.f32 %v1200_v7, %v2122_v44  ;;  %v1205_v19 = vmax.f32 %v1201_v8, %v2124_v45 }
 0x4c7   : > { %v1154_v17 = vmax.f32 %v1134_v10, %v1151_v15  ;;  %v1155_v18 = vmax.f32 %v1135_v11, %v1145_v12  ;;  %v1590_v20 = vpop.permute.xlu1 %1589  ;;  %v1585_v57 = vpop.permute.xlu0 %1584  ;;  %v1216_v21 = vsel %vm402_vm1, %v1567_v9, %v1566_v3  ;;  %v1222_v22 = vsel %vm402_vm1, %v1566_v3, -1e+30 }
 0x4c8   : > { %v1592_v23 = vunpack.i.h.bf16 %v1590_v20  ;;  %v1591_v24 = vunpack.i.l.bf16 %v1590_v20  ;;  %v1224_v27 = vsel %vm1772_vm3, %v1216_v21, -1e+30  ;;  %v1225_v28 = vsel %vm1768_vm2, %v1222_v22, -1e+30 }
 0x4c9   : > { %v1587_v29 = vunpack.i.h.bf16 %v1585_v57  ;;  %v1586_v44 = vunpack.i.l.bf16 %v1585_v57  ;;  %v1228_v30 = vmax.f32 %v1204_v16, %v1224_v27  ;;  %v1229_v31 = vmax.f32 %v1205_v19, %v1225_v28 }
 0x4ca   : > { %v1189_v45 = vsel %vm379_vm10, %v1591_v24, %v1592_v23  ;;  %v1195_v32 = vsel %vm379_vm10, -1e+30, %v1591_v24 }
 0x4cb   : > { %v1198_v33 = vsel %vm1785_vm6, %v1195_v32, -1e+30  ;;  %v1199_v34 = vsel %vm1789_vm7, %v1189_v45, -1e+30  ;;  %v1165_v35 = vsel %vm354_vm8, %v1586_v44, %v1587_v29  ;;  %v1171_v36 = vsel %vm354_vm8, -1e+30, %v1586_v44  ;;  %v1595_v37 = vpop.permute.xlu1 %1594  ;;  %v1605_v38 = vpop.permute.xlu0 %1604 }
 0x4cc   : > { %v1174_v39 = vsel %vm1772_vm3, %v1171_v36, -1e+30  ;;  %v1175_v40 = vsel %vm1768_vm2, %v1165_v35, -1e+30  ;;  %v1597_v41 = vunpack.i.h.bf16 %v1595_v37  ;;  %v1596_v42 = vunpack.i.l.bf16 %v1595_v37 }
 0x4cd   : > { %v1178_v43 = vmax.f32 %v1154_v17, %v1174_v39  ;;  %v1179_v46 = vmax.f32 %v1155_v18, %v1175_v40  ;;  %v1252_v47 = vmax.f32 %v1228_v30, %v1248_v53  ;;  %v1253_v48 = vmax.f32 %v1229_v31, %v1249_v54 }
 0x4ce   : > { %v1264_v49 = vsel %vm442_vm4, %v1597_v41, %v1596_v42  ;;  %v1270_v50 = vsel %vm442_vm4, %v1596_v42, -1e+30  ;;  %v1607_v51 = vunpack.i.h.bf16 %v1605_v38  ;;  %v1606_v52 = vunpack.i.l.bf16 %v1605_v38 }
 0x4cf   : > { %v1202_v55 = vmax.f32 %v1178_v43, %v1198_v33  ;;  %v1272_v56 = vmax.f32 %v1252_v47, %v1264_v49  ;;  %v1273_v59 = vmax.f32 %v1253_v48, %v1270_v50  ;;  %v1203_v60 = vmax.f32 %v1179_v46, %v1199_v34  ;;  %v1600_v61 = vpop.permute.xlu1 %1599  ;;  %v1610_v63 = vpop.permute.xlu0 %1609 }
 0x4d0   : > { %v1217_v0 = vsel %vm402_vm1, %v1607_v51, %v1606_v52  ;;  %v1223_v1 = vsel %vm402_vm1, %v1606_v52, -1e+30  ;;  %v1602_v2 = vunpack.i.h.bf16 %v1600_v61  ;;  %v1601_v4 = vunpack.i.l.bf16 %v1600_v61 }
 0x4d1   : > { %v1206_v53 = vmax.f32 %v1202_v55, %v2158_v62  ;;  %v1207_v54 = vmax.f32 %v1203_v60, %v2148_v58  ;;  %v1226_v5 = vsel %vm1772_vm3, %v1217_v0, -1e+30  ;;  %v1227_v6 = vsel %vm1768_vm2, %v1223_v1, -1e+30 }
 0x4d2   : > { %v1284_v7 = vsel %vm457_vm0, %v1602_v2, %v1601_v4  ;;  %v1290_v8 = vsel %vm457_vm0, %v1601_v4, -1e+30  ;;  %v1612_v9 = vunpack.i.h.bf16 %v1610_v63  ;;  %v1611_v3 = vunpack.i.l.bf16 %v1610_v63 }
 0x4d3   : > { %v1230_v10 = vmax.f32 %v1206_v53, %v1226_v5  ;;  %v1231_v11 = vmax.f32 %v1207_v54, %v1227_v6  ;;  %v1292_v12 = vsel %vm1772_vm3, %v1284_v7, -1e+30  ;;  %v1293_v58 = vsel %vm1768_vm2, %v1290_v8, -1e+30  ;;  %v1620_v62 = vpop.permute.xlu1 %1619  ;;  %v1615_v15 = vpop.permute.xlu0 %1614 }
 0x4d4   : > { %v1296_v16 = vmax.f32 %v1272_v56, %v1292_v12  ;;  %v1241_v17 = vsel %vm423_vm5, %v1612_v9, %v1611_v3  ;;  %v1247_v18 = vsel %vm423_vm5, %v1611_v3, -1e+30  ;;  %v1622_v19 = vunpack.i.h.bf16 %v1620_v62 }
 0x4d5   : > { %v1250_v20 = vsel %vm1785_vm6, %v1241_v17, -1e+30  ;;  %v1251_v57 = vsel %vm1789_vm7, %v1247_v18, -1e+30  ;;  %v1621_v21 = vunpack.i.l.bf16 %v1620_v62  ;;  %v1617_v22 = vunpack.i.h.bf16 %v1615_v15 }
 0x4d6   : > { %v1616_v23 = vunpack.i.l.bf16 %v1615_v15  ;;  %v1255_v24 = vmax.f32 %v1231_v11, %v1251_v57  ;;  %v1297_v27 = vmax.f32 %v1273_v59, %v1293_v58  ;;  %v1254_v28 = vmax.f32 %v1230_v10, %v1250_v20 }
 0x4d7   : > { %v1285_v29 = vsel %vm457_vm0, %v1622_v19, %v1621_v21  ;;  %v1291_v44 = vsel %vm457_vm0, %v1621_v21, -1e+30  ;;  %vm1407_vm0 = vcmask 523264  }
 0x4d8   : > { %v1295_v30 = vsel %vm1768_vm2, %v1291_v44, -1e+30  ;;  %v1265_v25 = vsel %vm442_vm4, %v1617_v22, %v1616_v23  ;;  %v1271_v31 = vsel %vm442_vm4, %v1616_v23, -1e+30  ;;  %1396 = vmatprep.mubr.f32.mxu1 %v1297_v27  ;;  %v1294_v26 = vsel %vm1772_vm3, %v1285_v29, -1e+30 }
 0x4d9   : > { %v1275_v45 = vmax.f32 %v1255_v24, %v1271_v31  ;;  %1397 = vmatmul.mubr.f32.vlgmr.msra.gmra.mxu1 %v1296_v16  ;;  %v1274_v32 = vmax.f32 %v1254_v28, %v1265_v25 }
 0x4db   : > { %v1299_v33 = vmax.f32 %v1275_v45, %v1295_v30  ;;  %v1298_v34 = vmax.f32 %v1274_v32, %v1294_v26 }
 0x4dd   : > { %1401 = vmatprep.mubr.f32.mxu1 %v1299_v33 }
 0x4de   : > { %1402 = vmatmul.mubr.f32.gmra.mxu1 %v1298_v34 }
 0x599   : > { %v1517_v35 = vpop.f32.mrf.mxu1 }
 0x59b   : > { %v1518_v13 = vpop.f32.mrf.mxu1 }
 0x59c   : > { %v1519_v36 = vadd.f32 %v1518_v13, %v1517_v35 }
 0x59e   : > { %1408 = vst.msk [vmem:[%s305_s14] sm:$0xff] %vm1407_vm0, %v1519_v36  ;;  %v1520_v37 = vpop.f32.mrf.mxu1 }
 0x5a0   : > { %v1521_v14 = vpop.f32.mrf.mxu1 }
 0x5a1   : > { %v1522_v38 = vadd.f32 %v1521_v14, %v1520_v37 }
 0x5a3   : > { %1409 = vst.msk [vmem:[%s305_s14 + $0x8] sm:$0xff] %vm1407_vm0, %v1522_v38 }
 0x5a4 PF: > { %s18_s27 = sadd.s32 1, %s1676_s27  }
 0x5a5   : > { %p15_p4 = scmp.ge.s32.totalorder %s18_s27, 4  }
 0x5a7   :  { %17 = sbr.rel (!%p15_p4) target bundleno = 1 (0x1), region = 82 }

</bundles_post_ra>
